<compile_context>
chip_gen: v5e
topology: v5e:2x2
jax: 0.10.0
libtpu: 0.0.40
codegen_flags: <defaults>
</compile_context>

<pallas_src>
import functools

import jax
import jax.numpy as jnp
from jax.experimental import pallas as pl
from jax.experimental.pallas import tpu as pltpu

BN_EPS = 1e-5
PARITY_SUB = 32  # pad Cout to a multiple of 32 so 4*Cp is a multiple of 128 lanes


# --------------------------------------------------------------------------- #
# Kernel 1: fused (upsample-folded) 3x3 conv + bias, plus partial BN statistics
# --------------------------------------------------------------------------- #
def conv_stats_kernel(x_ref, w_ref, b_ref, y_ref, s_ref):
    # x_ref: (1, H+2, W+2, Cin)  zero-padded ORIGINAL-resolution input (batch n)
    # w_ref: (9*Cin, 4*Cp)       bf16 upsample-folded, channel-padded weights
    # b_ref: (1, 4*Cp)           f32 parity-tiled conv bias
    # y_ref: (1, TH0*W, 4*Cp)    f32 conv+bias tile (columns = (pr, pc, Cp))
    # s_ref: (1, 1, 2, 4*Cp)     f32 per-tile [column sum ; column sum-of-squares]
    rt = pl.program_id(1)
    _, _, wp2, cin = x_ref.shape
    w_in = wp2 - 2
    rows = y_ref.shape[1]
    th0 = rows // w_in                         # original-resolution rows per tile
    a0 = pl.multiple_of(rt * th0, th0)         # first original row of this tile

    # im2col at ORIGINAL resolution: 9 targeted ref slices, concatenated along
    # the lane axis -> (rows, 9*Cin).  The upsample never gets materialized.
    taps = []
    for i in range(3):
        for j in range(3):
            t = x_ref[0, pl.ds(a0 + i, th0), pl.ds(j, w_in), :]   # (th0, W, Cin)
            taps.append(t.reshape(rows, cin))
    patches = jnp.concatenate(taps, axis=-1).astype(jnp.bfloat16)

    # One bf16 MXU matmul, f32 accumulation; 4*Cp columns -> lane-dense.
    acc = jnp.dot(patches, w_ref[...], preferred_element_type=jnp.float32)
    acc = acc + b_ref[...]

    y_ref[...] = acc[None]

    # Partial BatchNorm statistics; reduced globally outside the kernel.
    s = jnp.concatenate(
        [jnp.sum(acc, axis=0, keepdims=True),
         jnp.sum(acc * acc, axis=0, keepdims=True)], axis=0)      # (2, 4*Cp)
    s_ref[...] = s[None, None]


# --------------------------------------------------------------------------- #
# Kernel 2: folded BatchNorm affine (single FMA) + ReLU, lane-dense elementwise
# --------------------------------------------------------------------------- #
def bn_relu_kernel(y_ref, sc_ref, sh_ref, o_ref):
    o_ref[...] = jnp.maximum(y_ref[...] * sc_ref[...] + sh_ref[...], 0.0)


# --------------------------------------------------------------------------- #
# Wrapper
# --------------------------------------------------------------------------- #
def _fold_upsample_into_weights(w_oihw, cp):
    """Fold nearest-x2 upsample + 3x3 conv into one (9*Cin, 4*Cp) matmul operand.

    Output columns are ordered (row_parity, col_parity, padded_Cout); for output
    pixel (2a+pr, 2b+pc) the conv over the upsampled image reduces exactly to a
    3x3 stencil over the 1-padded ORIGINAL image with these combined weights.
    """
    cout, cin = w_oihw.shape[0], w_oihw.shape[1]
    w_hwio = jnp.transpose(w_oihw, (2, 3, 1, 0))              # (dy, dx, Cin, Cout)
    # sel[p, i, d] = 1 iff tap d of parity p reads folded original offset i.
    sel = jnp.array([[[1, 0, 0], [0, 1, 1], [0, 0, 0]],
                     [[0, 0, 0], [1, 1, 0], [0, 0, 1]]], w_hwio.dtype)
    wf = jnp.einsum('pid,qjx,dxcf->ijcpqf', sel, sel, w_hwio)  # (3,3,Cin,2,2,Cout)
    wf = wf.reshape(9 * cin, 4, cout)
    wf = jnp.pad(wf, ((0, 0), (0, 0), (0, cp - cout)))
    return wf.reshape(9 * cin, 4 * cp)


def _tile_channels(v, cout, cp, cols):
    return jnp.tile(jnp.pad(v, (0, cp - cout)), 4).reshape(1, cols)


@functools.partial(jax.jit, static_argnames=("row_tile",))
def up_conv_forward(x_nchw, w_oihw, bias, gamma, beta, *, row_tile=8):
    """Upsample(x2, nearest) -> Conv3x3(pad=1)+bias -> BatchNorm2d (batch stats)
    -> ReLU.  NCHW in / NCHW out to match the PyTorch module interface."""
    n, cin, h, w = x_nchw.shape
    cout = w_oihw.shape[0]
    hu, wu = 2 * h, 2 * w
    cp = ((cout + PARITY_SUB - 1) // PARITY_SUB) * PARITY_SUB
    cols = 4 * cp                                        # multiple of 128 lanes

    th0 = row_tile if (h % row_tile == 0 and (row_tile * w) % 8 == 0) else h
    n_rt = h // th0
    rows = th0 * w

    # Glue (one fused XLA pass): NCHW -> NHWC + 1-pixel zero pad of the ORIGINAL-
    # resolution input only.  In a full NHWC U-Net this transpose disappears.
    # TODO(synk): keep activations NHWC end-to-end across the network.
    xp = jnp.pad(jnp.transpose(x_nchw, (0, 2, 3, 1)),
                 ((0, 0), (1, 1), (1, 1), (0, 0)))       # (N, H+2, W+2, Cin)

    w_packed = _fold_upsample_into_weights(w_oihw, cp).astype(jnp.bfloat16)
    b_packed = _tile_channels(bias, cout, cp, cols)

    flops = 2 * n * hu * wu * 9 * cin * cout
    y, part = pl.pallas_call(
        conv_stats_kernel,
        out_shape=(jax.ShapeDtypeStruct((n, h * w, cols), jnp.float32),
                   jax.ShapeDtypeStruct((n, n_rt, 2, cols), jnp.float32)),
        grid_spec=pltpu.PrefetchScalarGridSpec(
            num_scalar_prefetch=0,
            grid=(n, n_rt),
            in_specs=[
                pl.BlockSpec((1, h + 2, w + 2, cin), lambda b, r: (b, 0, 0, 0)),
                pl.BlockSpec((9 * cin, cols), lambda b, r: (0, 0)),
                pl.BlockSpec((1, cols), lambda b, r: (0, 0)),
            ],
            out_specs=[
                pl.BlockSpec((1, rows, cols), lambda b, r: (b, r, 0)),
                pl.BlockSpec((1, 1, 2, cols), lambda b, r: (b, r, 0, 0)),
            ]),
        compiler_params=pltpu.CompilerParams(
            dimension_semantics=("parallel", "parallel"),
            vmem_limit_bytes=48 * 1024 * 1024),
        cost_estimate=pl.CostEstimate(
            flops=flops, transcendentals=0,
            bytes_accessed=(xp.size * 4 + w_packed.size * 2
                            + n * h * w * cols * 4)),
    )(xp, w_packed, b_packed)

    # Global BN statistics (two-pass BN): tiny reduction + affine fold in JAX.
    tot = jnp.sum(part, axis=(0, 1))                              # (2, cols)
    csum = jnp.sum(tot[0].reshape(4, cp)[:, :cout], axis=0)
    csq = jnp.sum(tot[1].reshape(4, cp)[:, :cout], axis=0)
    cnt = jnp.float32(n * hu * wu)
    mean = csum / cnt
    var = csq / cnt - mean * mean
    scale = gamma * jax.lax.rsqrt(var + BN_EPS)
    shift = beta - mean * scale
    sc_packed = _tile_channels(scale, cout, cp, cols)
    sh_packed = _tile_channels(shift, cout, cp, cols)

    y2 = pl.pallas_call(
        bn_relu_kernel,
        out_shape=jax.ShapeDtypeStruct((n, h * w, cols), jnp.float32),
        grid_spec=pltpu.PrefetchScalarGridSpec(
            num_scalar_prefetch=0,
            grid=(n, n_rt),
            in_specs=[
                pl.BlockSpec((1, rows, cols), lambda b, r: (b, r, 0)),
                pl.BlockSpec((1, cols), lambda b, r: (0, 0)),
                pl.BlockSpec((1, cols), lambda b, r: (0, 0)),
            ],
            out_specs=pl.BlockSpec((1, rows, cols), lambda b, r: (b, r, 0))),
        compiler_params=pltpu.CompilerParams(
            dimension_semantics=("parallel", "parallel"),
            vmem_limit_bytes=48 * 1024 * 1024),
        cost_estimate=pl.CostEstimate(
            flops=2 * n * h * w * cols, transcendentals=0,
            bytes_accessed=2 * n * h * w * cols * 4),
    )(y, sc_packed, sh_packed)

    # De-interleave parities + drop channel padding (one fused XLA pass over the
    # real-sized output), then back to NCHW for the PyTorch interface.
    out = y2.reshape(n, h, w, 2, 2, cp)[..., :cout]
    out = jnp.transpose(out, (0, 1, 3, 2, 4, 5)).reshape(n, hu, wu, cout)
    return jnp.transpose(out, (0, 3, 1, 2))


# --------------------------------------------------------------------------- #
# Pure-JAX reference (mirrors the PyTorch forward, training-mode BN)
# --------------------------------------------------------------------------- #
def reference_forward(x_nchw, w_oihw, bias, gamma, beta):
    x_nhwc = jnp.transpose(x_nchw, (0, 2, 3, 1))
    x_up = jnp.repeat(jnp.repeat(x_nhwc, 2, axis=1), 2, axis=2)
    w_hwio = jnp.transpose(w_oihw, (2, 3, 1, 0))
    y = jax.lax.conv_general_dilated(
        x_up, w_hwio, window_strides=(1, 1), padding="SAME",
        dimension_numbers=("NHWC", "HWIO", "NHWC"),
        precision=jax.lax.Precision.HIGHEST) + bias[None, None, None, :]
    mean = jnp.mean(y, axis=(0, 1, 2))
    var = jnp.mean((y - mean) ** 2, axis=(0, 1, 2))
    y = (y - mean) * jax.lax.rsqrt(var + BN_EPS) * gamma + beta
    y = jnp.maximum(y, 0.0)
    return jnp.transpose(y, (0, 3, 1, 2))


if __name__ == "__main__":
    key = jax.random.PRNGKey(0)
    k_x, k_w, k_b = jax.random.split(key, 3)

    N, Cin, Cout, H, W = 2, 4, 8, 16, 16

    x = jax.random.normal(k_x, (N, Cin, H, W), dtype=jnp.float32)
    fan_in = Cin * 3 * 3
    w = jax.random.uniform(k_w, (Cout, Cin, 3, 3), dtype=jnp.float32,
                           minval=-1.0, maxval=1.0) / jnp.sqrt(fan_in)
    b = jax.random.uniform(k_b, (Cout,), dtype=jnp.float32,
                           minval=-1.0, maxval=1.0) / jnp.sqrt(fan_in)
    gamma = jnp.ones((Cout,), jnp.float32)
    beta = jnp.zeros((Cout,), jnp.float32)

    out = up_conv_forward(x, w, b, gamma, beta)
    out = jax.block_until_ready(out)

    ref = reference_forward(x, w, b, gamma, beta)
    assert out.shape == (N, Cout, 2 * H, 2 * W), out.shape
    # bf16 MXU inputs (per perf guidance) vs an f32 HIGHEST-precision reference:
    # observed error is O(1e-3); 2e-2 leaves comfortable margin.
    assert jnp.allclose(out, ref, atol=2e-2, rtol=2e-2), (
        float(jnp.max(jnp.abs(out - ref))))

    print("KERNEL_OK")
</pallas_src>

<mosaic_0001>
module attributes {stable_mosaic.version = 11 : i64} {
  func.func @conv_stats_kernel(%arg0: i32, %arg1: i32, %arg2: memref<1x18x18x4xf32, #tpu.memory_space<vmem>>, %arg3: memref<36x128xbf16, #tpu.memory_space<vmem>>, %arg4: memref<1x128xf32, #tpu.memory_space<vmem>>, %arg5: memref<1x128x128xf32, #tpu.memory_space<vmem>>, %arg6: memref<1x1x2x128xf32, #tpu.memory_space<vmem>>) attributes {dimension_semantics = [#tpu.dimension_semantics<parallel>, #tpu.dimension_semantics<parallel>], iteration_bounds = array<i64: 2, 2>, scalar_prefetch = 0 : i64, scratch_operands = 0 : i64, tpu.core_type = #tpu.core_type<tc>, window_params = [{transform_indices = @transform_0, window_bounds = array<i64: 1, 18, 18, 4>}, {pipeline_mode = #tpu.pipeline_mode<synchronous>, transform_indices = @transform_1, window_bounds = array<i64: 36, 128>}, {pipeline_mode = #tpu.pipeline_mode<synchronous>, transform_indices = @transform_2, window_bounds = array<i64: 1, 128>}, {transform_indices = @transform_3, window_bounds = array<i64: 1, 128, 128>}, {transform_indices = @transform_4, window_bounds = array<i64: 1, 1, 2, 128>}]} {
    %c8_i32 = arith.constant 8 : i32
    %0 = arith.muli %arg1, %c8_i32 : i32
    %1 = tpu.assume_multiple %0, 8 : i32
    %c0_i32 = arith.constant 0 : i32
    %2 = arith.addi %1, %c0_i32 : i32
    %c0 = arith.constant 0 : index
    %3 = arith.index_cast %2 : i32 to index
    %c0_0 = arith.constant 0 : index
    %c0_1 = arith.constant 0 : index
    %4 = vector.load %arg2[%c0, %3, %c0_0, %c0_1] : memref<1x18x18x4xf32, #tpu.memory_space<vmem>>, vector<1x8x16x4xf32>
    %5 = vector.shape_cast %4 : vector<1x8x16x4xf32> to vector<8x16x4xf32>
    %6 = vector.shape_cast %5 : vector<8x16x4xf32> to vector<128x4xf32>
    %c0_i32_2 = arith.constant 0 : i32
    %7 = arith.addi %1, %c0_i32_2 : i32
    %c0_3 = arith.constant 0 : index
    %8 = arith.index_cast %7 : i32 to index
    %c1 = arith.constant 1 : index
    %c0_4 = arith.constant 0 : index
    %9 = vector.load %arg2[%c0_3, %8, %c1, %c0_4] : memref<1x18x18x4xf32, #tpu.memory_space<vmem>>, vector<1x8x16x4xf32>
    %10 = vector.shape_cast %9 : vector<1x8x16x4xf32> to vector<8x16x4xf32>
    %11 = vector.shape_cast %10 : vector<8x16x4xf32> to vector<128x4xf32>
    %c0_i32_5 = arith.constant 0 : i32
    %12 = arith.addi %1, %c0_i32_5 : i32
    %c0_6 = arith.constant 0 : index
    %13 = arith.index_cast %12 : i32 to index
    %c2 = arith.constant 2 : index
    %c0_7 = arith.constant 0 : index
    %14 = vector.load %arg2[%c0_6, %13, %c2, %c0_7] : memref<1x18x18x4xf32, #tpu.memory_space<vmem>>, vector<1x8x16x4xf32>
    %15 = vector.shape_cast %14 : vector<1x8x16x4xf32> to vector<8x16x4xf32>
    %16 = vector.shape_cast %15 : vector<8x16x4xf32> to vector<128x4xf32>
    %c1_i32 = arith.constant 1 : i32
    %17 = arith.addi %1, %c1_i32 : i32
    %c0_8 = arith.constant 0 : index
    %18 = arith.index_cast %17 : i32 to index
    %c0_9 = arith.constant 0 : index
    %c0_10 = arith.constant 0 : index
    %19 = vector.load %arg2[%c0_8, %18, %c0_9, %c0_10] : memref<1x18x18x4xf32, #tpu.memory_space<vmem>>, vector<1x8x16x4xf32>
    %20 = vector.shape_cast %19 : vector<1x8x16x4xf32> to vector<8x16x4xf32>
    %21 = vector.shape_cast %20 : vector<8x16x4xf32> to vector<128x4xf32>
    %c1_i32_11 = arith.constant 1 : i32
    %22 = arith.addi %1, %c1_i32_11 : i32
    %c0_12 = arith.constant 0 : index
    %23 = arith.index_cast %22 : i32 to index
    %c1_13 = arith.constant 1 : index
    %c0_14 = arith.constant 0 : index
    %24 = vector.load %arg2[%c0_12, %23, %c1_13, %c0_14] : memref<1x18x18x4xf32, #tpu.memory_space<vmem>>, vector<1x8x16x4xf32>
    %25 = vector.shape_cast %24 : vector<1x8x16x4xf32> to vector<8x16x4xf32>
    %26 = vector.shape_cast %25 : vector<8x16x4xf32> to vector<128x4xf32>
    %c1_i32_15 = arith.constant 1 : i32
    %27 = arith.addi %1, %c1_i32_15 : i32
    %c0_16 = arith.constant 0 : index
    %28 = arith.index_cast %27 : i32 to index
    %c2_17 = arith.constant 2 : index
    %c0_18 = arith.constant 0 : index
    %29 = vector.load %arg2[%c0_16, %28, %c2_17, %c0_18] : memref<1x18x18x4xf32, #tpu.memory_space<vmem>>, vector<1x8x16x4xf32>
    %30 = vector.shape_cast %29 : vector<1x8x16x4xf32> to vector<8x16x4xf32>
    %31 = vector.shape_cast %30 : vector<8x16x4xf32> to vector<128x4xf32>
    %c2_i32 = arith.constant 2 : i32
    %32 = arith.addi %1, %c2_i32 : i32
    %c0_19 = arith.constant 0 : index
    %33 = arith.index_cast %32 : i32 to index
    %c0_20 = arith.constant 0 : index
    %c0_21 = arith.constant 0 : index
    %34 = vector.load %arg2[%c0_19, %33, %c0_20, %c0_21] : memref<1x18x18x4xf32, #tpu.memory_space<vmem>>, vector<1x8x16x4xf32>
    %35 = vector.shape_cast %34 : vector<1x8x16x4xf32> to vector<8x16x4xf32>
    %36 = vector.shape_cast %35 : vector<8x16x4xf32> to vector<128x4xf32>
    %c2_i32_22 = arith.constant 2 : i32
    %37 = arith.addi %1, %c2_i32_22 : i32
    %c0_23 = arith.constant 0 : index
    %38 = arith.index_cast %37 : i32 to index
    %c1_24 = arith.constant 1 : index
    %c0_25 = arith.constant 0 : index
    %39 = vector.load %arg2[%c0_23, %38, %c1_24, %c0_25] : memref<1x18x18x4xf32, #tpu.memory_space<vmem>>, vector<1x8x16x4xf32>
    %40 = vector.shape_cast %39 : vector<1x8x16x4xf32> to vector<8x16x4xf32>
    %41 = vector.shape_cast %40 : vector<8x16x4xf32> to vector<128x4xf32>
    %c2_i32_26 = arith.constant 2 : i32
    %42 = arith.addi %1, %c2_i32_26 : i32
    %c0_27 = arith.constant 0 : index
    %43 = arith.index_cast %42 : i32 to index
    %c2_28 = arith.constant 2 : index
    %c0_29 = arith.constant 0 : index
    %44 = vector.load %arg2[%c0_27, %43, %c2_28, %c0_29] : memref<1x18x18x4xf32, #tpu.memory_space<vmem>>, vector<1x8x16x4xf32>
    %45 = vector.shape_cast %44 : vector<1x8x16x4xf32> to vector<8x16x4xf32>
    %46 = vector.shape_cast %45 : vector<8x16x4xf32> to vector<128x4xf32>
    %47 = tpu.concatenate %6, %11, %16, %21, %26, %31, %36, %41, %46 in 1 : vector<128x4xf32>, vector<128x4xf32>, vector<128x4xf32>, vector<128x4xf32>, vector<128x4xf32>, vector<128x4xf32>, vector<128x4xf32>, vector<128x4xf32>, vector<128x4xf32> -> vector<128x36xf32>
    %48 = arith.truncf %47 : vector<128x36xf32> to vector<128x36xbf16>
    %c0_30 = arith.constant 0 : index
    %c0_31 = arith.constant 0 : index
    %49 = vector.load %arg3[%c0_30, %c0_31] : memref<36x128xbf16, #tpu.memory_space<vmem>>, vector<36x128xbf16>
    %cst = arith.constant dense<0.000000e+00> : vector<128x128xf32>
    %50 = tpu.matmul %48, %49, %cst {dimension_numbers = #tpu.dot_dimension_numbers<[1], [0], [0], [1], [0, 0, 1, 1], [], []>} : vector<128x36xbf16>, vector<36x128xbf16>, vector<128x128xf32> -> vector<128x128xf32>
    %c0_32 = arith.constant 0 : index
    %c0_33 = arith.constant 0 : index
    %51 = vector.load %arg4[%c0_32, %c0_33] : memref<1x128xf32, #tpu.memory_space<vmem>>, vector<1x128xf32>
    %52 = vector.broadcast %51 : vector<1x128xf32> to vector<128x128xf32>
    %53 = arith.addf %50, %52 : vector<128x128xf32>
    %54 = vector.shape_cast %53 : vector<128x128xf32> to vector<1x128x128xf32>
    %c0_34 = arith.constant 0 : index
    %c0_35 = arith.constant 0 : index
    %c0_36 = arith.constant 0 : index
    %55 = vector.load %arg5[%c0_34, %c0_35, %c0_36] : memref<1x128x128xf32, #tpu.memory_space<vmem>>, vector<1x128x128xf32>
    tpu.vector_store %arg5[%c0_34, %c0_35, %c0_36], %54 {strides = array<i32>} : memref<1x128x128xf32, #tpu.memory_space<vmem>>, vector<1x128x128xf32>,
    %cst_37 = arith.constant dense<0.000000e+00> : vector<128xf32>
    %56 = vector.multi_reduction <add>, %53, %cst_37 [0] : vector<128x128xf32> to vector<128xf32>
    %57 = vector.shape_cast %56 : vector<128xf32> to vector<1x128xf32>
    %58 = arith.mulf %53, %53 : vector<128x128xf32>
    %cst_38 = arith.constant dense<0.000000e+00> : vector<128xf32>
    %59 = vector.multi_reduction <add>, %58, %cst_38 [0] : vector<128x128xf32> to vector<128xf32>
    %60 = vector.shape_cast %59 : vector<128xf32> to vector<1x128xf32>
    %61 = tpu.concatenate %57, %60 in 0 : vector<1x128xf32>, vector<1x128xf32> -> vector<2x128xf32>
    %62 = vector.shape_cast %61 : vector<2x128xf32> to vector<1x1x2x128xf32>
    %c0_39 = arith.constant 0 : index
    %c0_40 = arith.constant 0 : index
    %c0_41 = arith.constant 0 : index
    %c0_42 = arith.constant 0 : index
    %63 = vector.load %arg6[%c0_39, %c0_40, %c0_41, %c0_42] : memref<1x1x2x128xf32, #tpu.memory_space<vmem>>, vector<1x1x2x128xf32>
    tpu.vector_store %arg6[%c0_39, %c0_40, %c0_41, %c0_42], %62 {strides = array<i32>} : memref<1x1x2x128xf32, #tpu.memory_space<vmem>>, vector<1x1x2x128xf32>,
    return
  }
  func.func @transform_0(%arg0: i32, %arg1: i32) -> (i32, i32, i32, i32) {
    %c0_i32 = arith.constant 0 : i32
    %c0_i32_0 = arith.constant 0 : i32
    %c0_i32_1 = arith.constant 0 : i32
    %c0_i32_2 = arith.constant 0 : i32
    return %arg0, %c0_i32, %c0_i32_0, %c0_i32_1 : i32, i32, i32, i32
  }
  func.func @transform_1(%arg0: i32, %arg1: i32) -> (i32, i32) {
    %c0_i32 = arith.constant 0 : i32
    %c0_i32_0 = arith.constant 0 : i32
    %c0_i32_1 = arith.constant 0 : i32
    return %c0_i32, %c0_i32_0 : i32, i32
  }
  func.func @transform_2(%arg0: i32, %arg1: i32) -> (i32, i32) {
    %c0_i32 = arith.constant 0 : i32
    %c0_i32_0 = arith.constant 0 : i32
    %c0_i32_1 = arith.constant 0 : i32
    return %c0_i32, %c0_i32_0 : i32, i32
  }
  func.func @transform_3(%arg0: i32, %arg1: i32) -> (i32, i32, i32) {
    %c0_i32 = arith.constant 0 : i32
    %c0_i32_0 = arith.constant 0 : i32
    return %arg0, %arg1, %c0_i32 : i32, i32, i32
  }
  func.func @transform_4(%arg0: i32, %arg1: i32) -> (i32, i32, i32, i32) {
    %c0_i32 = arith.constant 0 : i32
    %c0_i32_0 = arith.constant 0 : i32
    %c0_i32_1 = arith.constant 0 : i32
    return %arg0, %arg1, %c0_i32, %c0_i32_0 : i32, i32, i32, i32
  }
}

module attributes {stable_mosaic.version = 11 : i64} {
  func.func @bn_relu_kernel(%arg0: i32, %arg1: i32, %arg2: memref<1x128x128xf32, #tpu.memory_space<vmem>>, %arg3: memref<1x128xf32, #tpu.memory_space<vmem>>, %arg4: memref<1x128xf32, #tpu.memory_space<vmem>>, %arg5: memref<1x128x128xf32, #tpu.memory_space<vmem>>) attributes {dimension_semantics = [#tpu.dimension_semantics<parallel>, #tpu.dimension_semantics<parallel>], iteration_bounds = array<i64: 2, 2>, scalar_prefetch = 0 : i64, scratch_operands = 0 : i64, tpu.core_type = #tpu.core_type<tc>, window_params = [{transform_indices = @transform_0, window_bounds = array<i64: 1, 128, 128>}, {pipeline_mode = #tpu.pipeline_mode<synchronous>, transform_indices = @transform_1, window_bounds = array<i64: 1, 128>}, {pipeline_mode = #tpu.pipeline_mode<synchronous>, transform_indices = @transform_2, window_bounds = array<i64: 1, 128>}, {transform_indices = @transform_3, window_bounds = array<i64: 1, 128, 128>}]} {
    %c0 = arith.constant 0 : index
    %c0_0 = arith.constant 0 : index
    %c0_1 = arith.constant 0 : index
    %0 = vector.load %arg2[%c0, %c0_0, %c0_1] : memref<1x128x128xf32, #tpu.memory_space<vmem>>, vector<1x128x128xf32>
    %c0_2 = arith.constant 0 : index
    %c0_3 = arith.constant 0 : index
    %1 = vector.load %arg3[%c0_2, %c0_3] : memref<1x128xf32, #tpu.memory_space<vmem>>, vector<1x128xf32>
    %2 = vector.shape_cast %1 : vector<1x128xf32> to vector<1x1x128xf32>
    %3 = vector.broadcast %2 : vector<1x1x128xf32> to vector<1x128x128xf32>
    %4 = arith.mulf %0, %3 : vector<1x128x128xf32>
    %c0_4 = arith.constant 0 : index
    %c0_5 = arith.constant 0 : index
    %5 = vector.load %arg4[%c0_4, %c0_5] : memref<1x128xf32, #tpu.memory_space<vmem>>, vector<1x128xf32>
    %6 = vector.shape_cast %5 : vector<1x128xf32> to vector<1x1x128xf32>
    %7 = vector.broadcast %6 : vector<1x1x128xf32> to vector<1x128x128xf32>
    %8 = arith.addf %4, %7 : vector<1x128x128xf32>
    %cst = arith.constant 0.000000e+00 : f32
    %9 = vector.broadcast %cst : f32 to vector<1x128x128xf32>
    %10 = arith.maximumf %8, %9 : vector<1x128x128xf32>
    %c0_6 = arith.constant 0 : index
    %c0_7 = arith.constant 0 : index
    %c0_8 = arith.constant 0 : index
    %11 = vector.load %arg5[%c0_6, %c0_7, %c0_8] : memref<1x128x128xf32, #tpu.memory_space<vmem>>, vector<1x128x128xf32>
    tpu.vector_store %arg5[%c0_6, %c0_7, %c0_8], %10 {strides = array<i32>} : memref<1x128x128xf32, #tpu.memory_space<vmem>>, vector<1x128x128xf32>,
    return
  }
  func.func @transform_0(%arg0: i32, %arg1: i32) -> (i32, i32, i32) {
    %c0_i32 = arith.constant 0 : i32
    %c0_i32_0 = arith.constant 0 : i32
    return %arg0, %arg1, %c0_i32 : i32, i32, i32
  }
  func.func @transform_1(%arg0: i32, %arg1: i32) -> (i32, i32) {
    %c0_i32 = arith.constant 0 : i32
    %c0_i32_0 = arith.constant 0 : i32
    %c0_i32_1 = arith.constant 0 : i32
    return %c0_i32, %c0_i32_0 : i32, i32
  }
  func.func @transform_2(%arg0: i32, %arg1: i32) -> (i32, i32) {
    %c0_i32 = arith.constant 0 : i32
    %c0_i32_0 = arith.constant 0 : i32
    %c0_i32_1 = arith.constant 0 : i32
    return %c0_i32, %c0_i32_0 : i32, i32
  }
  func.func @transform_3(%arg0: i32, %arg1: i32) -> (i32, i32, i32) {
    %c0_i32 = arith.constant 0 : i32
    %c0_i32_0 = arith.constant 0 : i32
    return %arg0, %arg1, %c0_i32 : i32, i32, i32
  }
}

</mosaic_0001>

<bundles_post_ra>
// kernel: tile.18
= control target key start
LH: loop header
LB: loop body
LE: loop exit
PB: predicated region body
PF: predicated region fallthrough
CT: control target
= control target key end

     0   :  { %s22_s0 = inlined_call_operand.vmem [shape: f32[32], index: 0, kind: input, shape index: {}]   ;;  %s23_s1 = inlined_call_operand.vmem [shape: f32[4,32], index: 1, kind: output, shape index: {}]  }
   0x1   :  { %v4_v0 = vld [vmem:[%s22_s0] ss:$0 sm:$0xff] }
   0x2   :  { %5 = vst [vmem:[%s23_s1] sm:$0xf] %v4_v0 }

// kernel: tile.19
= control target key start
LH: loop header
LB: loop body
LE: loop exit
PB: predicated region body
PF: predicated region fallthrough
CT: control target
= control target key end

     0   :  { %s37_s8 = smov 32   ;;  %s38_s9 = smov 64   ;;  %vm7_vm0 = vcmask 261120   ;;  %vm13_vm1 = vcmask 1048320   ;;  %vm19_vm2 = vcmask 785920   ;;  %vm25_vm3 = vcmask 523520   ;;  %s55_s0 = inlined_call_operand.vmem [shape: f32[4,32], index: 0, kind: input, shape index: {}]   ;;  %s56_s1 = inlined_call_operand.vmem [shape: f32[1,128], index: 1, kind: output, shape index: {}]  }
   0x1   :  { %v4_v0 = vld [vmem:[%s55_s0] sm:$0xf]  ;;  %s36_s0 = smov 96  }
   0x2   :  { %5 = vst [vmem:[#allocation1] sm:$0xf] %v4_v0 }
   0x9   :  { %v10_v1 = vld [vmem:[#allocation1 + $0x3] sm:$0x1]   ;;  %v22_v2 = vld [vmem:[#allocation1 + $0x1] sm:$0x1]   ;;  %v16_v3 = vld [vmem:[#allocation1 + $0x2] sm:$0x1]  }
   0xa   :  { %11 = vrot.lane.b32.xlu0 %v10_v1, %s36_s0  ;;  %23 = vrot.lane.b32.xlu1 %v22_v2, %s37_s8  ;;  %v6_v4 = vld [vmem:[#allocation1] sm:$0x1]  }
   0xb   :  { %8 = vst.msk [vmem:[#allocation0] sm:$0x1] %vm7_vm0, %v6_v4  }
  0x12   :  { %17 = vrot.lane.b32.xlu0 %v16_v3, %s38_s9 }
  0x7c   :  { %v12_v5 = vpop.permute.xlu0 %11   ;;  %v24_v6 = vpop.permute.xlu1 %23  }
  0x7d   :  { %14 = vst.msk [vmem:[#allocation0] sm:$0x1] %vm13_vm1, %v12_v5  }
  0x84   :  { %v18_v7 = vpop.permute.xlu0 %17  }
  0x85   :  { %20 = vst.msk [vmem:[#allocation0] sm:$0x1] %vm19_vm2, %v18_v7  }
  0x86   :  { %26 = vst.msk [vmem:[#allocation0] sm:$0x1] %vm25_vm3, %v24_v6  }
  0x8d   :  { %v29_v8 = vld [vmem:[#allocation0] sm:$0x1] }
  0x8e   :  { %32 = vst [vmem:[%s56_s1] sm:$0x1] %v29_v8 }

// kernel: squeeze.2
= control target key start
LH: loop header
LB: loop body
LE: loop exit
PB: predicated region body
PF: predicated region fallthrough
CT: control target
= control target key end

     0   :  { %s37_s8 = smov 32   ;;  %s38_s9 = smov 64   ;;  %vm7_vm0 = vcmask 261120   ;;  %s55_s0 = inlined_call_operand.vmem [shape: f32[128], index: 0, kind: input, shape index: {}]   ;;  %s56_s1 = inlined_call_operand.vmem [shape: f32[4,32], index: 1, kind: output, shape index: {}]  }
   0x1   :  { %v4_v0 = vld [vmem:[%s55_s0] sm:$0x1]  ;;  %s36_s0 = smov 96  }
   0x2   :  { %5 = vst [vmem:[#allocation1] sm:$0x1] %v4_v0 }
   0x9   :  { %v9_v1 = vld [vmem:[#allocation1] sm:$0x1]  }
   0xa   :  { %v21_v2 = vld [vmem:[#allocation1] sm:$0x1]   ;;  %10 = vrot.lane.b32.xlu0 %v9_v1, %s36_s0 }
   0xb   :  { %22 = vrot.lane.b32.xlu1 %v21_v2, %s37_s8  ;;  %v15_v3 = vld [vmem:[#allocation1] sm:$0x1]  }
   0xc   :  { %v6_v4 = vld [vmem:[#allocation1] sm:$0x1]  }
   0xd   :  { %8 = vst.msk [vmem:[#allocation0] sm:$0x1] %vm7_vm0, %v6_v4  }
  0x12   :  { %16 = vrot.lane.b32.xlu0 %v15_v3, %s38_s9 }
  0x7c   :  { %v11_v5 = vpop.permute.xlu0 %10  }
  0x7d   :  { %v23_v6 = vpop.permute.xlu1 %22   ;;  %14 = vst.msk [vmem:[#allocation0 + $0x1] sm:$0x1] %vm7_vm0, %v11_v5  }
  0x7e   :  { %26 = vst.msk [vmem:[#allocation0 + $0x3] sm:$0x1] %vm7_vm0, %v23_v6  }
  0x84   :  { %v17_v7 = vpop.permute.xlu0 %16  }
  0x85   :  { %20 = vst.msk [vmem:[#allocation0 + $0x2] sm:$0x1] %vm7_vm0, %v17_v7  }
  0x8c   :  { %v29_v8 = vld [vmem:[#allocation0] sm:$0xf] }
  0x8d   :  { %32 = vst [vmem:[%s56_s1] sm:$0xf] %v29_v8 }

// kernel: up_conv_forward.3
= control target key start
LH: loop header
LB: loop body
LE: loop exit
PB: predicated region body
PF: predicated region fallthrough
CT: control target
= control target key end

     0   :  { %s503_s12 = smov 0   ;;  %s505_s13 = smov 0   ;;  %s614_s0 = inlined_call_operand.vmem [shape: f32[2,256,128], index: 0, kind: input, shape index: {}]   ;;  %s615_s1 = inlined_call_operand.vmem [shape: f32[1,128], index: 1, kind: input, shape index: {}]   ;;  %s616_s2 = inlined_call_operand.vmem [shape: f32[1,128], index: 2, kind: input, shape index: {}]   ;;  %s617_s3 = inlined_call_operand.vmem [shape: f32[2,256,128], index: 3, kind: output, shape index: {}]  }
   0x1   :  { %s507_s14 = smov 0   ;;  %s509_s15 = smov 0  }
   0x2   :  { %s511_s16 = smov 0  }
   0x3 LB: > { %s22_s17 = sadd.s32 1, %s473_s14  ;;  %s25_s18 = sadd.s32 1, %s477_s15  ;;  %s481_s16 = sphi %s511_s16, %s13_s16   ;;  %s477_s15 = sphi %s509_s15, %s621_s15   ;;  %s473_s14 = sphi %s507_s14, %s620_s14   ;;  %s469_s13 = sphi %s505_s13, %s619_s13   ;;  %s465_s12 = sphi %s503_s12, %s618_s12  }
   0x4   : > { %p23_p0 = scmp.ge.s32.totalorder %s22_s17, 2  ;;  %p392_p1 = scmp.ge.s32.totalorder %s481_s16, 1 }
   0x5   : > { %p158_p2 = scmp.lt.s32.totalorder %s481_s16, 5 }
   0x6   : > { %s623_s17 = smov (%p23_p0, %s22_s17), 0  ;;  %s625_s18 = smov (!%p23_p0, %s25_s18), %s477_s15 }
   0x7   : > { %p159_p3 = pnand %p392_p1, %p158_p2  ;;  %p27_p4 = scmp.ge.s32.totalorder %s625_s18, 2 }
   0x8   : > { %s393_s19 = sshll.u32 (!%p159_p3), %s465_s12, 4  ;;  %p191_p5 = scmp.lt.s32.totalorder (!%p159_p3), %s469_s13, 1 }
   0x9   : > { %s627_s18 = smov (%p27_p4, %s625_s18), 0  ;;  %162 = sbr.rel (%p159_p3) target bundleno = 42 (0x2a), region = 32 }
   0xa   : > { %p193_p6 = scmp.lt.s32.totalorder (!%p159_p3), %s393_s19, 31 }
   0xe   : > { %s629_s13 = smov (!%p191_p5, %s469_s13), 1  ;;  %s631_s19 = smov (!%p193_p6, %s393_s19), 31  ;;  %v441_v0 = vld [vmem:[%s615_s1] ss:$0 sm:$0xff] }
   0xf   : > { %s394_s20 = sshll.u32 %s629_s13, 5  ;;  %v544_v1 = vld [vmem:[%s616_s2] ss:$0 sm:$0xff] }
  0x10   : > { %s196_s21 = sadd.s32 %s394_s20, %s631_s19 }
  0x11   : > { %s395_s24 = sshll.u32 %s196_s21, 3 }
  0x12   : > { %s539_s27 = scalar_lea.vmem %s614_s0, %s395_s24  ;;  %s560_s5 = scalar_lea.vmem %s617_s3, %s395_s24 }
  0x13   : > { %v210_v2 = vld [vmem:[%s539_s27] sm:$0xff]  ;;  %v211_v3 = vld [vmem:[%s539_s27 + $0x8] sm:$0xff]  ;;  %v212_v4 = vld [vmem:[%s539_s27 + $0x10] sm:$0xff] }
  0x14   : > { %v230_v5 = vmul.f32 %v441_v0, %v210_v2  ;;  %v231_v6 = vmul.f32 %v441_v0, %v211_v3  ;;  %v232_v7 = vmul.f32 %v441_v0, %v212_v4  ;;  %v213_v8 = vld [vmem:[%s539_s27 + $0x18] sm:$0xff]  ;;  %v214_v9 = vld [vmem:[%s539_s27 + $0x20] sm:$0xff]  ;;  %v215_v10 = vld [vmem:[%s539_s27 + $0x28] sm:$0xff] }
  0x15   : > { %v233_v11 = vmul.f32 %v441_v0, %v213_v8  ;;  %v234_v12 = vmul.f32 %v441_v0, %v214_v9  ;;  %v235_v13 = vmul.f32 %v441_v0, %v215_v10  ;;  %v216_v14 = vld [vmem:[%s539_s27 + $0x30] sm:$0xff]  ;;  %v217_v15 = vld [vmem:[%s539_s27 + $0x38] sm:$0xff]  ;;  %v218_v24 = vld [vmem:[%s539_s27 + $0x40] sm:$0xff] }
  0x16   : > { %v250_v16 = vadd.f32 %v544_v1, %v230_v5  ;;  %v251_v17 = vadd.f32 %v544_v1, %v231_v6  ;;  %v252_v18 = vadd.f32 %v544_v1, %v232_v7  ;;  %v236_v19 = vmul.f32 %v441_v0, %v216_v14  ;;  %v219_v25 = vld [vmem:[%s539_s27 + $0x48] sm:$0xff]  ;;  %v220_v26 = vld [vmem:[%s539_s27 + $0x50] sm:$0xff]  ;;  %v221_v31 = vld [vmem:[%s539_s27 + $0x58] sm:$0xff] }
  0x17   : > { %v253_v20 = vadd.f32 %v544_v1, %v233_v11  ;;  %v254_v21 = vadd.f32 %v544_v1, %v234_v12  ;;  %v255_v22 = vadd.f32 %v544_v1, %v235_v13  ;;  %v237_v23 = vmul.f32 %v441_v0, %v217_v15  ;;  %v222_v32 = vld [vmem:[%s539_s27 + $0x60] sm:$0xff]  ;;  %v223_v33 = vld [vmem:[%s539_s27 + $0x68] sm:$0xff]  ;;  %v224_v37 = vld [vmem:[%s539_s27 + $0x70] sm:$0xff] }
  0x18   : > { %v266_v27 = vmax.f32 %v250_v16, 0.0  ;;  %v267_v28 = vmax.f32 %v251_v17, 0.0  ;;  %v268_v29 = vmax.f32 %v252_v18, 0.0  ;;  %v256_v30 = vadd.f32 %v544_v1, %v236_v19  ;;  %v225_v42 = vld [vmem:[%s539_s27 + $0x78] sm:$0xff] }
  0x19   : > { %v269_v34 = vmax.f32 %v253_v20, 0.0  ;;  %v270_v35 = vmax.f32 %v254_v21, 0.0  ;;  %v257_v36 = vadd.f32 %v544_v1, %v237_v23  ;;  %v271_v38 = vmax.f32 %v255_v22, 0.0 }
  0x1a   : > { %282 = vst [vmem:[%s560_s5] sm:$0xff] %v266_v27  ;;  %v238_v39 = vmul.f32 %v441_v0, %v218_v24  ;;  %v239_v40 = vmul.f32 %v441_v0, %v219_v25  ;;  %v240_v41 = vmul.f32 %v441_v0, %v220_v26  ;;  %v272_v43 = vmax.f32 %v256_v30, 0.0 }
  0x1b   : > { %283 = vst [vmem:[%s560_s5 + $0x8] sm:$0xff] %v267_v28  ;;  %v241_v44 = vmul.f32 %v441_v0, %v221_v31  ;;  %v242_v45 = vmul.f32 %v441_v0, %v222_v32  ;;  %v243_v46 = vmul.f32 %v441_v0, %v223_v33  ;;  %v244_v50 = vmul.f32 %v441_v0, %v224_v37 }
  0x1c   : > { %284 = vst [vmem:[%s560_s5 + $0x10] sm:$0xff] %v268_v29  ;;  %v258_v47 = vadd.f32 %v544_v1, %v238_v39  ;;  %v259_v48 = vadd.f32 %v544_v1, %v239_v40  ;;  %v260_v49 = vadd.f32 %v544_v1, %v240_v41  ;;  %v273_v51 = vmax.f32 %v257_v36, 0.0 }
  0x1d   : > { %285 = vst [vmem:[%s560_s5 + $0x18] sm:$0xff] %v269_v34  ;;  %v261_v52 = vadd.f32 %v544_v1, %v241_v44  ;;  %v245_v53 = vmul.f32 %v441_v0, %v225_v42  ;;  %v262_v55 = vadd.f32 %v544_v1, %v242_v45  ;;  %v263_v57 = vadd.f32 %v544_v1, %v243_v46 }
  0x1e   : > { %286 = vst [vmem:[%s560_s5 + $0x20] sm:$0xff] %v270_v35  ;;  %v274_v54 = vmax.f32 %v258_v47, 0.0  ;;  %v275_v56 = vmax.f32 %v259_v48, 0.0  ;;  %v276_v58 = vmax.f32 %v260_v49, 0.0  ;;  %v264_v59 = vadd.f32 %v544_v1, %v244_v50 }
  0x1f   : > { %287 = vst [vmem:[%s560_s5 + $0x28] sm:$0xff] %v271_v38  ;;  %v277_v60 = vmax.f32 %v261_v52, 0.0  ;;  %v265_v61 = vadd.f32 %v544_v1, %v245_v53  ;;  %v278_v62 = vmax.f32 %v262_v55, 0.0  ;;  %v279_v63 = vmax.f32 %v263_v57, 0.0 }
  0x20   : > { %288 = vst [vmem:[%s560_s5 + $0x30] sm:$0xff] %v272_v43  ;;  %v280_v0 = vmax.f32 %v264_v59, 0.0 }
  0x21   : > { %289 = vst [vmem:[%s560_s5 + $0x38] sm:$0xff] %v273_v51  ;;  %v281_v2 = vmax.f32 %v265_v61, 0.0 }
  0x22   : > { %290 = vst [vmem:[%s560_s5 + $0x40] sm:$0xff] %v274_v54 }
  0x23   : > { %291 = vst [vmem:[%s560_s5 + $0x48] sm:$0xff] %v275_v56 }
  0x24   : > { %292 = vst [vmem:[%s560_s5 + $0x50] sm:$0xff] %v276_v58 }
  0x25   : > { %293 = vst [vmem:[%s560_s5 + $0x58] sm:$0xff] %v277_v60 }
  0x26   : > { %294 = vst [vmem:[%s560_s5 + $0x60] sm:$0xff] %v278_v62 }
  0x27   : > { %295 = vst [vmem:[%s560_s5 + $0x68] sm:$0xff] %v279_v63 }
  0x28   : > { %296 = vst [vmem:[%s560_s5 + $0x70] sm:$0xff] %v280_v0 }
  0x29   : > { %297 = vst [vmem:[%s560_s5 + $0x78] sm:$0xff] %v281_v2 }
  0x2a PF: > { %s13_s16 = sadd.s32 1, %s481_s16   ;;  %s618_s12 = smov %s473_s14 }
  0x2b   : > { %p10_p7 = scmp.ge.s32.totalorder %s13_s16, 6   ;;  %s619_s13 = smov %s477_s15 }
  0x2c   : > { %s620_s14 = smov %s623_s17  ;;  %s621_s15 = smov %s627_s18 }
  0x2d   :  { %12 = sbr.rel (!%p10_p7) target bundleno = 3 (0x3), region = 62 }

// kernel: up_conv_forward.2
= control target key start
LH: loop header
LB: loop body
LE: loop exit
PB: predicated region body
PF: predicated region fallthrough
CT: control target
= control target key end

     0   :  { %s1957_s15 = smov 0   ;;  %s1959_s16 = smov 0   ;;  %s2552_s0 = inlined_call_operand.vmem [shape: f32[2,18,18,4], index: 0, kind: input, shape index: {}]   ;;  %s2553_s1 = inlined_call_operand.vmem [shape: bf16[36,128], index: 1, kind: input, shape index: {}]   ;;  %s2554_s2 = inlined_call_operand.vmem [shape: f32[1,128], index: 2, kind: input, shape index: {}]   ;;  %s2555_s3 = inlined_call_operand.vmem [shape: f32[2,256,128], index: 3, kind: output, shape index: {0}]   ;;  %s2556_s4 = inlined_call_operand.vmem [shape: f32[2,2,2,128], index: 4, kind: output, shape index: {1}]  }
   0x1   :  { %s1961_s17 = smov 0   ;;  %s1963_s18 = smov 0  }
   0x2   :  { %s1965_s19 = smov 0  }
   0x3 LB: > { %s24_s20 = sadd.s32 1, %s1914_s17  ;;  %s27_s21 = sadd.s32 1, %s1918_s18  ;;  %s1922_s19 = sphi %s1965_s19, %s15_s19   ;;  %s1918_s18 = sphi %s1963_s18, %s2560_s18   ;;  %s1914_s17 = sphi %s1961_s17, %s2559_s17   ;;  %s1910_s16 = sphi %s1959_s16, %s2558_s16   ;;  %s1906_s15 = sphi %s1957_s15, %s2557_s15  }
   0x4   : > { %p25_p0 = scmp.ge.s32.totalorder %s24_s20, 2  ;;  %p1376_p1 = scmp.ge.s32.totalorder %s1922_s19, 1 }
   0x5   : > { %p181_p2 = scmp.lt.s32.totalorder %s1922_s19, 5 }
   0x6   : > { %s2562_s20 = smov (%p25_p0, %s24_s20), 0  ;;  %s2564_s21 = smov (!%p25_p0, %s27_s21), %s1918_s18 }
   0x7   : > { %p182_p3 = pnand %p1376_p1, %p181_p2  ;;  %p29_p4 = scmp.ge.s32.totalorder %s2564_s21, 2 }
   0x8   : > { %p219_p5 = scmp.lt.s32.totalorder (!%p182_p3), %s1910_s16, 1  ;;  %s1384_s22 = smul.u32 (!%p182_p3), 192, %s1906_s15 }
   0x9   : > { %s2566_s21 = smov (%p29_p4, %s2564_s21), 0  ;;  %185 = sbr.rel (%p182_p3) target bundleno = 471 (0x1d7), region = 32 }
   0xa   : > { %s1924_s28 = smov (!%p182_p3), 4   ;;  %s1925_s29 = smov (!%p182_p3), 8  }
   0xb   : > { %s1926_s30 = smov (!%p182_p3), 12   ;;  %s1927_s5 = smov (!%p182_p3), 24  }
   0xc   : > { %s1928_s6 = smov (!%p182_p3), 20   ;;  %s1929_s7 = smov (!%p182_p3), 16  }
   0xd   : > { %s1930_s8 = smov (!%p182_p3), 32   ;;  %s1931_s9 = smov (!%p182_p3), 28  }
   0xe   : > { %s2568_s16 = smov (!%p219_p5, %s1910_s16), 1  ;;  %vm908_vm0 = vcmask 31744   ;;  %vm925_vm1 = vcmask 64512   ;;  %vm942_vm2 = vcmask 97280   ;;  %vm1101_vm3 = vcmask 1041408   ;;  %p236_p7 = scmp.lt.s32.totalorder %s1906_s15, 1 }
   0xf   : > { %s1514_s23 = smul.u32 432, %s2568_s16  ;;  %vm959_vm4 = vcmask 130048   ;;  %vm976_vm5 = vcmask 162816   ;;  %vm993_vm6 = vcmask 195584   ;;  %vm1010_vm7 = vcmask 228352   ;;  %s1379_s24 = sshll.u32 %s2568_s16, 5 }
  0x10   : > { %vm1027_vm8 = vcmask 261120   ;;  %vm1076_vm9 = vcmask 293888   ;;  %vm1228_vm10 = vcmask 1040384  }
  0x11   : > { %s223_s26 = scalar_lea.vmem %s2552_s0, %s1514_s23  ;;  %s1378_s23 = sshll.u32 %s1906_s15, 4 }
  0x12   : > { %s1996_s27 = scalar_lea.vmem %s223_s26, %s1384_s22  ;;  %p227_p6 = scmp.lt.s32.totalorder %s1378_s23, 31 }
  0x13   : > { %v270_v0 = vld [vmem:[%s1996_s27 + $0x61] sm:$0xff]  ;;  %v271_v1 = vld [vmem:[%s1996_s27 + $0x69] sm:$0xff]  ;;  %v266_v2 = vld [vmem:[%s1996_s27 + $0x31] sm:$0xff]  ;;  %s2572_s15 = smov (!%p236_p7, %s1906_s15), 1 }
  0x14   : > { %v2001_v3 = vpack.i.bf16 %v271_v1, %v270_v0  ;;  %v267_v4 = vld [vmem:[%s1996_s27 + $0x39] sm:$0xff]  ;;  %v262_v5 = vld [vmem:[%s1996_s27 + $0x1] sm:$0xff]  ;;  %v263_v6 = vld [vmem:[%s1996_s27 + $0x9] sm:$0xff]  ;;  %s2570_s23 = smov (!%p227_p6, %s1378_s23), 31 }
  0x15   : > { %v2006_v7 = vpack.i.bf16 %v267_v4, %v266_v2  ;;  %v1563_v8 = vpack.i.bf16 %v263_v6, %v262_v5  ;;  %v272_v9 = vld [vmem:[%s1996_s27 + $0x79] sm:$0xff]  ;;  %v273_v10 = vld [vmem:[%s1996_s27 + $0x81] sm:$0xff]  ;;  %v268_v11 = vld [vmem:[%s1996_s27 + $0x49] sm:$0xff]  ;;  %s230_s25 = sadd.s32 %s1379_s24, %s2570_s23 }
  0x16   : > { %1584 = vrot.lane.b32.xlu2 %v2001_v3, %s1924_s28  ;;  %v269_v12 = vld [vmem:[%s1996_s27 + $0x51] sm:$0xff]  ;;  %v264_v13 = vld [vmem:[%s1996_s27 + $0x19] sm:$0xff]  ;;  %v265_v14 = vld [vmem:[%s1996_s27 + $0x21] sm:$0xff]  ;;  %v2016_v15 = vpack.i.bf16 %v273_v10, %v272_v9  ;;  %s1380_s26 = sshll.u32 %s230_s25, 3 }
  0x17   : > { %1574 = vrot.lane.b32.xlu1 %v2006_v7, %s1924_s28  ;;  %1564 = vrot.lane.b32.xlu0 %v1563_v8, %s1924_s28  ;;  %v2018_v16 = vpack.i.bf16 %v269_v12, %v268_v11  ;;  %v2020_v17 = vpack.i.bf16 %v265_v14, %v264_v13  ;;  %v278_v18 = vld [vmem:[%s1996_s27 + $0x2] sm:$0xff]  ;;  %v279_v19 = vld [vmem:[%s1996_s27 + $0xa] sm:$0xff] }
  0x18   : > { %v276_v20 = vld [vmem:[%s1996_s27 + $0xa9] sm:$0xff]  ;;  %v277_v21 = vld [vmem:[%s1996_s27 + $0xb1] sm:$0xff]  ;;  %v275_v23 = vld [vmem:[%s1996_s27 + $0x99] sm:$0xff]  ;;  %v1603_v24 = vpack.i.bf16 %v279_v19, %v278_v18 }
  0x19   : > { %v274_v22 = vld [vmem:[%s1996_s27 + $0x91] sm:$0xff]  ;;  %v2031_v25 = vpack.i.bf16 %v277_v21, %v276_v20  ;;  %v283_v30 = vld [vmem:[%s1996_s27 + $0x3a] sm:$0xff]  ;;  %v281_v32 = vld [vmem:[%s1996_s27 + $0x22] sm:$0xff] }
  0x1a   : > { %v2033_v26 = vpack.i.bf16 %v275_v23, %v274_v22  ;;  %v284_v27 = vld [vmem:[%s1996_s27 + $0x4a] sm:$0xff]  ;;  %v285_v28 = vld [vmem:[%s1996_s27 + $0x52] sm:$0xff]  ;;  %v280_v31 = vld [vmem:[%s1996_s27 + $0x1a] sm:$0xff] }
  0x1b   : > { %v282_v29 = vld [vmem:[%s1996_s27 + $0x32] sm:$0xff]  ;;  %v2044_v33 = vpack.i.bf16 %v285_v28, %v284_v27  ;;  %v1608_v35 = vpack.i.bf16 %v281_v32, %v280_v31  ;;  %v291_v37 = vld [vmem:[%s1996_s27 + $0x9a] sm:$0xff]  ;;  %v289_v39 = vld [vmem:[%s1996_s27 + $0x82] sm:$0xff] }
  0x1c   : > { %v2046_v34 = vpack.i.bf16 %v283_v30, %v282_v29  ;;  %v290_v36 = vld [vmem:[%s1996_s27 + $0x92] sm:$0xff]  ;;  %v288_v38 = vld [vmem:[%s1996_s27 + $0x7a] sm:$0xff]  ;;  %v286_v40 = vld [vmem:[%s1996_s27 + $0x62] sm:$0xff] }
  0x1d   : > { %v287_v41 = vld [vmem:[%s1996_s27 + $0x6a] sm:$0xff]  ;;  %v2059_v42 = vpack.i.bf16 %v291_v37, %v290_v36  ;;  %v2061_v43 = vpack.i.bf16 %v289_v39, %v288_v38  ;;  %v2075_v46 = vld [vmem:[%s1996_s27 + $0x38] sm:$0xff]  ;;  %v2081_v48 = vld [vmem:[%s1996_s27 + $0x20] sm:$0xff] }
  0x1e   : > { %1589 = vrot.lane.b32.xlu2 %v2016_v15, %s1924_s28  ;;  %v2063_v44 = vpack.i.bf16 %v287_v41, %v286_v40  ;;  %v2068_v45 = vld [vmem:[%s1996_s27 + $0x30] sm:$0xff]  ;;  %v2078_v47 = vld [vmem:[%s1996_s27 + $0x18] sm:$0xff]  ;;  %v1396_v55 = vld [vmem:[%s1996_s27 + $0x80] sm:$0xff] }
  0x1f   : > { %1579 = vrot.lane.b32.xlu1 %v2018_v16, %s1924_s28  ;;  %1569 = vrot.lane.b32.xlu0 %v2020_v17, %s1924_s28  ;;  %v292_v49 = vld [vmem:[%s1996_s27 + $0xaa] sm:$0xff]  ;;  %v293_v50 = vld [vmem:[%s1996_s27 + $0xb2] sm:$0xff]  ;;  %v1648_v51 = vpack.i.bf16 %v2075_v46, %v2068_v45  ;;  %v1643_v52 = vpack.i.bf16 %v2081_v48, %v2078_v47 }
  0x20   : > { %v2089_v53 = vpack.i.bf16 %v293_v50, %v292_v49  ;;  %v1395_v54 = vld [vmem:[%s1996_s27 + $0x78] sm:$0xff]  ;;  %v2096_v56 = vld [vmem:[%s1996_s27 + $0x60] sm:$0xff]  ;;  %v2099_v57 = vld [vmem:[%s1996_s27 + $0x68] sm:$0xff] }
  0x21   : > { %v2102_v58 = vld [vmem:[%s1996_s27 + $0x48] sm:$0xff]  ;;  %v2105_v59 = vld [vmem:[%s1996_s27 + $0x50] sm:$0xff]  ;;  %v2107_v60 = vpack.i.bf16 %v1396_v55, %v1395_v54  ;;  %v1658_v61 = vpack.i.bf16 %v2099_v57, %v2096_v56  ;;  %v1401_v63 = vld [vmem:[%s1996_s27 + $0xc0] sm:$0xff] }
  0x22   : > { %v1653_v62 = vpack.i.bf16 %v2105_v59, %v2102_v58  ;;  %v1402_v0 = vld [vmem:[%s1996_s27 + $0xc8] sm:$0xff]  ;;  %v2120_v2 = vld [vmem:[%s1996_s27 + $0xb0] sm:$0xff]  ;;  %v2126_v5 = vld [vmem:[%s1996_s27 + $0x98] sm:$0xff] }
  0x23   : > { %v2117_v1 = vld [vmem:[%s1996_s27 + $0xa8] sm:$0xff]  ;;  %v2123_v4 = vld [vmem:[%s1996_s27 + $0x90] sm:$0xff]  ;;  %v1678_v6 = vpack.i.bf16 %v1402_v0, %v1401_v63 }
  0x24   : > { %v2130_v8 = vpack.i.bf16 %v2120_v2, %v2117_v1  ;;  %v1668_v9 = vpack.i.bf16 %v2126_v5, %v2123_v4  ;;  %v1465_v19 = vld [vmem:[%s1996_s27 + $0xc1] sm:$0xff]  ;;  %v1466_v20 = vld [vmem:[%s1996_s27 + $0xc9] sm:$0xff] }
  0x25   : > { %v1482_v27 = vld [vmem:[%s1996_s27 + $0xca] sm:$0xff] }
  0x26   : > { %1604 = vrot.lane.b32.xlu2 %v1603_v24, %s1925_s29  ;;  %v2186_v24 = vpack.i.bf16 %v1466_v20, %v1465_v19 }
  0x27   : > { %1599 = vrot.lane.b32.xlu1 %v2031_v25, %s1924_s28  ;;  %1594 = vrot.lane.b32.xlu0 %v2033_v26, %s1924_s28 }
  0x2e   : > { %1619 = vrot.lane.b32.xlu2 %v2044_v33, %s1925_s29 }
  0x2f   : > { %1614 = vrot.lane.b32.xlu1 %v2046_v34, %s1925_s29  ;;  %1609 = vrot.lane.b32.xlu0 %v1608_v35, %s1925_s29 }
  0x36   : > { %1634 = vrot.lane.b32.xlu2 %v2059_v42, %s1925_s29 }
  0x37   : > { %1629 = vrot.lane.b32.xlu1 %v2061_v43, %s1925_s29  ;;  %1624 = vrot.lane.b32.xlu0 %v2063_v44, %s1925_s29 }
  0x3e   : > { %1649 = vrot.lane.b32.xlu2 %v1648_v51, %s1926_s30 }
  0x3f   : > { %1644 = vrot.lane.b32.xlu1 %v1643_v52, %s1926_s30  ;;  %1639 = vrot.lane.b32.xlu0 %v2089_v53, %s1925_s29 }
  0x46   : > { %1664 = vrot.lane.b32.xlu2 %v2107_v60, %s1926_s30 }
  0x47   : > { %1659 = vrot.lane.b32.xlu1 %v1658_v61, %s1926_s30  ;;  %1654 = vrot.lane.b32.xlu0 %v1653_v62, %s1926_s30 }
  0x4e   : > { %1679 = vrot.lane.b32.xlu2 %v1678_v6, %s1926_s30 }
  0x4f   : > { %1674 = vrot.lane.b32.xlu1 %v2130_v8, %s1926_s30  ;;  %1669 = vrot.lane.b32.xlu0 %v1668_v9, %s1926_s30 }
  0x56   : > { %1694 = vrot.lane.b32.xlu2 %v1648_v51, %s1927_s5 }
  0x57   : > { %1689 = vrot.lane.b32.xlu1 %v1608_v35, %s1928_s6  ;;  %1684 = vrot.lane.b32.xlu0 %v2020_v17, %s1929_s7 }
  0x5e   : > { %1709 = vrot.lane.b32.xlu2 %v2018_v16, %s1929_s7 }
  0x5f   : > { %1704 = vrot.lane.b32.xlu1 %v2046_v34, %s1930_s8  ;;  %1699 = vrot.lane.b32.xlu0 %v2006_v7, %s1931_s9 }
  0x66   : > { %1724 = vrot.lane.b32.xlu2 %v1658_v61, %s1927_s5 }
  0x67   : > { %1719 = vrot.lane.b32.xlu1 %v2016_v15, %s1929_s7  ;;  %1714 = vrot.lane.b32.xlu0 %v2044_v33, %s1928_s6 }
  0x6e   : > { %1739 = vrot.lane.b32.xlu2 %v1668_v9, %s1927_s5 }
  0x6f   : > { %1734 = vrot.lane.b32.xlu1 %v2001_v3, %s1931_s9  ;;  %1729 = vrot.lane.b32.xlu0 %v2061_v43, %s1928_s6 }
  0x70   : > { %v2155_v10 = vpop.permute.xlu2 %1584 }
  0x76   : > { %1754 = vrot.lane.b32.xlu2 %v2059_v42, %s1930_s8 }
  0x77   : > { %1749 = vrot.lane.b32.xlu1 %v2033_v26, %s1931_s9  ;;  %1744 = vrot.lane.b32.xlu0 %v2063_v44, %s1930_s8 }
  0x78   : > { %v1590_v11 = vpop.permute.xlu2 %1589 }
  0x79   : > { %v1592_v12 = vunpack.i.h.bf16 %v1590_v11  ;;  %v1591_v13 = vunpack.i.l.bf16 %v1590_v11 }
  0x7b   : > { %v2164_v14 = vsel %vm908_vm0, %v1395_v54, %v1591_v13  ;;  %v2167_v17 = vsel %vm908_vm0, %v1396_v55, %v1592_v12 }
  0x7e   : > { %1769 = vrot.lane.b32.xlu2 %v2031_v25, %s1929_s7 }
  0x7f   : > { %1764 = vrot.lane.b32.xlu1 %v2046_v34, %s1928_s6  ;;  %1759 = vrot.lane.b32.xlu0 %v2006_v7, %s1929_s7 }
  0x80   : > { %v2175_v18 = vpop.permute.xlu2 %1604 }
  0x86   : > { %1784 = vrot.lane.b32.xlu2 %v2018_v16, %s1931_s9  ;;  %v1481_v16 = vld [vmem:[%s1996_s27 + $0xc2] sm:$0xff] }
  0x87   : > { %1779 = vrot.lane.b32.xlu1 %v2089_v53, %s1928_s6  ;;  %1774 = vrot.lane.b32.xlu0 %v1653_v62, %s1927_s5  ;;  %v2195_v35 = vpack.i.bf16 %v1482_v27, %v1481_v16 }
  0x88   : > { %v1620_v21 = vpop.permute.xlu2 %1619 }
  0x89   : > { %v1575_v22 = vpop.permute.xlu1 %1574  ;;  %v2184_v23 = vpop.permute.xlu0 %1564  ;;  %v1622_v28 = vunpack.i.h.bf16 %v1620_v21  ;;  %v1621_v29 = vunpack.i.l.bf16 %v1620_v21 }
  0x8a   : > { %v1577_v63 = vunpack.i.h.bf16 %v1575_v22  ;;  %v1576_v0 = vunpack.i.l.bf16 %v1575_v22 }
  0x8c   : > { %v913_v20 = vsel %vm908_vm0, %v2068_v45, %v1576_v0  ;;  %v1484_v0 = vld [vmem:[%s1996_s27 + $0xe2] sm:$0xff] }
  0x8e   : > { %1799 = vrot.lane.b32.xlu2 %v2186_v24, %s1931_s9 }
  0x8f   : > { %1794 = vrot.lane.b32.xlu1 %v2044_v33, %s1930_s8  ;;  %1789 = vrot.lane.b32.xlu0 %v1678_v6, %s1927_s5 }
  0x90   : > { %v1635_v7 = vpop.permute.xlu2 %1634 }
  0x91   : > { %v1580_v30 = vpop.permute.xlu1 %1579  ;;  %v1570_v31 = vpop.permute.xlu0 %1569  ;;  %v1637_v40 = vunpack.i.h.bf16 %v1635_v7  ;;  %v1636_v41 = vunpack.i.l.bf16 %v1635_v7 }
  0x92   : > { %v1582_v32 = vunpack.i.h.bf16 %v1580_v30  ;;  %v1581_v34 = vunpack.i.l.bf16 %v1580_v30 }
  0x94   : > { %v915_v36 = vsel %vm908_vm0, %v2102_v58, %v1581_v34  ;;  %v916_v37 = vsel %vm908_vm0, %v2105_v59, %v1582_v32 }
  0x95   : > { %v2202_v33 = vsel %vm925_vm1, %v915_v36, %v1621_v29  ;;  %v2205_v38 = vsel %vm925_vm1, %v916_v37, %v1622_v28  ;;  %v1504_v36 = vld [vmem:[%s2553_s1 + $0x8] sm:$0xff]  ;;  %v1467_v37 = vld [vmem:[%s1996_s27 + $0xd9] sm:$0xff] }
  0x96   : > { %1814 = vrot.lane.b32.xlu2 %v2063_v44, %s1928_s6 }
  0x97   : > { %1809 = vrot.lane.b32.xlu1 %v2001_v3, %s1929_s7  ;;  %1804 = vrot.lane.b32.xlu0 %v2195_v35, %s1930_s8 }
  0x98   : > { %v1650_v39 = vpop.permute.xlu2 %1649 }
  0x99   : > { %v1600_v49 = vpop.permute.xlu1 %1599  ;;  %v1595_v50 = vpop.permute.xlu0 %1594  ;;  %v1651_v6 = vunpack.i.l.bf16 %v1650_v39 }
  0x9a   : > { %v1602_v51 = vunpack.i.h.bf16 %v1600_v49  ;;  %v1601_v52 = vunpack.i.l.bf16 %v1600_v49  ;;  %v1597_v54 = vunpack.i.h.bf16 %v1595_v50  ;;  %v1596_v55 = vunpack.i.l.bf16 %v1595_v50 }
  0x9c   : > { %v2215_v58 = vsel %vm908_vm0, %v2117_v1, %v1601_v52  ;;  %v2219_v44 = vsel %vm908_vm0, %v2120_v2, %v1602_v51  ;;  %v921_v3 = vsel %vm908_vm0, %v2123_v4, %v1596_v55  ;;  %v922_v59 = vsel %vm908_vm0, %v2126_v5, %v1597_v54 }
  0x9d   : > { %v2226_v61 = vsel %vm925_vm1, %v921_v3, %v1636_v41  ;;  %v2229_v62 = vsel %vm925_vm1, %v922_v59, %v1637_v40  ;;  %v1572_v1 = vunpack.i.h.bf16 %v1570_v31  ;;  %v1571_v2 = vunpack.i.l.bf16 %v1570_v31  ;;  %v1452_v40 = vld [vmem:[%s1996_s27 + $0xe0] sm:$0xff] }
  0x9e   : > { %1829 = vrot.lane.b32.xlu2 %v2059_v42, %s1928_s6  ;;  %v1652_v5 = vunpack.i.h.bf16 %v1650_v39  ;;  %v1451_v39 = vld [vmem:[%s1996_s27 + $0xd8] sm:$0xff] }
  0x9f   : > { %1824 = vrot.lane.b32.xlu1 %v2107_v60, %s1927_s5  ;;  %1819 = vrot.lane.b32.xlu0 %v2033_v26, %s1929_s7  ;;  %v914_v60 = vsel %vm908_vm0, %v2075_v46, %v1577_v63  ;;  %v911_v26 = vsel %vm908_vm0, %v2078_v47, %v1571_v2  ;;  %v912_v21 = vsel %vm908_vm0, %v2081_v48, %v1572_v1  ;;  %v1056_v47 = vld [vmem:[%s2553_s1 + $0x10] sm:$0x3] }
  0xa0   : > { %v2237_v4 = vpop.permute.xlu2 %1664  ;;  %v1070_v48 = vunpack.c.l.b16 %v1056_v47  ;;  %v1868_v52 = vpack.i.bf16 %v1452_v40, %v1451_v39  ;;  %v246_v47 = vld [vmem:[%s1996_s27] sm:$0xff] }
  0xa1   : > { %v1615_v9 = vpop.permute.xlu1 %1614  ;;  %v1610_v11 = vpop.permute.xlu0 %1609 }
  0xa2   : > { %v1617_v12 = vunpack.i.h.bf16 %v1615_v9  ;;  %v1616_v13 = vunpack.i.l.bf16 %v1615_v9  ;;  %v1612_v42 = vunpack.i.h.bf16 %v1610_v11  ;;  %v1611_v19 = vunpack.i.l.bf16 %v1610_v11 }
  0xa3   : > { %v1073_v32 = vpack.c.b16 %v1070_v48, %v1070_v48  ;;  %v247_v48 = vld [vmem:[%s1996_s27 + $0x8] sm:$0xff] }
  0xa4   : > { %v2248_v22 = vsel %vm925_vm1, %v913_v20, %v1616_v13  ;;  %v2251_v7 = vsel %vm925_vm1, %v914_v60, %v1617_v12  ;;  %v928_v16 = vsel %vm925_vm1, %v911_v26, %v1611_v19  ;;  %v929_v27 = vsel %vm925_vm1, %v912_v21, %v1612_v42 }
  0xa5   : > { %v2256_v45 = vsel %vm942_vm2, %v928_v16, %v1651_v6  ;;  %v2259_v46 = vsel %vm942_vm2, %v929_v27, %v1652_v5  ;;  %v1103_v34 = vsel %vm1101_vm3, %v1073_v32, 0  ;;  %v1567_v26 = vunpack.i.h.bf16 %v2184_v23 }
  0xa6   : > { %1844 = vrot.lane.b32.xlu2 %v2061_v43, %s1930_s8  ;;  %1110 = vmatpush.bf16.msra.mxu0 %v1103_v34 }
  0xa7   : > { %1839 = vrot.lane.b32.xlu1 %v2130_v8, %s1927_s5  ;;  %1834 = vrot.lane.b32.xlu0 %v2016_v15, %s1931_s9 }
  0xa8   : > { %v1680_v30 = vpop.permute.xlu2 %1679  ;;  %1505 = vmatpush.bf16.msra.mxu1 %v1103_v34  ;;  %1506 = vmatpush.bf16.msra.mxu2 %v1103_v34 }
  0xa9   : > { %v1630_v28 = vpop.permute.xlu1 %1629  ;;  %v2270_v29 = vpop.permute.xlu0 %1624  ;;  %v1681_v41 = vunpack.i.l.bf16 %v1680_v30  ;;  %1507 = vmatpush.bf16.msra.mxu3 %v1103_v34 }
  0xaa   : > { %v1632_v43 = vunpack.i.h.bf16 %v1630_v28  ;;  %v1631_v31 = vunpack.i.l.bf16 %v1630_v28  ;;  %1111 = vmatpush.bf16.msra.mxu0 %v1504_v36  ;;  %v1607_v28 = vunpack.i.h.bf16 %v2175_v18 }
  0xac   : > { %v936_v15 = vsel %vm925_vm1, %v2164_v14, %v1631_v31  ;;  %v937_v8 = vsel %vm925_vm1, %v2167_v17, %v1632_v43  ;;  %v1468_v14 = vld [vmem:[%s1996_s27 + $0xe1] sm:$0xff]  ;;  %v1682_v17 = vunpack.i.h.bf16 %v1680_v30  ;;  %1508 = vmatpush.bf16.msra.mxu1 %v1504_v36  ;;  %1509 = vmatpush.bf16.msra.mxu2 %v1504_v36 }
  0xad   : > { %1510 = vmatpush.bf16.msra.mxu3 %v1504_v36 }
  0xae   : > { %1859 = vrot.lane.b32.xlu2 %v2186_v24, %s1929_s7 }
  0xaf   : > { %1849 = vrot.lane.b32.xlu0 %v2031_v25, %s1931_s9  ;;  %1854 = vrot.lane.b32.xlu1 %v2089_v53, %s1930_s8  ;;  %v1873_v25 = vpack.i.bf16 %v1468_v14, %v1467_v37  ;;  %v1503_v53 = vld [vmem:[%s2553_s1] sm:$0xff] }
  0xb0   : > { %v2294_v54 = vpop.permute.xlu2 %1694  ;;  %1112 = vmatpush.bf16.msra.mxu0 %v1503_v53  ;;  %1511 = vmatpush.bf16.msra.mxu1 %v1503_v53 }
  0xb1   : > { %v2289_v24 = vpop.permute.xlu1 %1644  ;;  %v1640_v49 = vpop.permute.xlu0 %1639  ;;  %1512 = vmatpush.bf16.msra.mxu2 %v1503_v53  ;;  %1513 = vmatpush.bf16.msra.mxu3 %v1503_v53 }
  0xb2   : > { %v1642_v50 = vunpack.i.h.bf16 %v1640_v49  ;;  %v1641_v51 = vunpack.i.l.bf16 %v1640_v49  ;;  %v1647_v43 = vunpack.i.h.bf16 %v2289_v24  ;;  %v1696_v49 = vunpack.i.l.bf16 %v2294_v54 }
  0xb4   : > { %v940_v55 = vsel %vm925_vm1, %v2215_v58, %v1641_v51  ;;  %v941_v3 = vsel %vm925_vm1, %v2219_v44, %v1642_v50  ;;  %v1483_v58 = vld [vmem:[%s1996_s27 + $0xda] sm:$0xff] }
  0xb5   : > { %v2301_v59 = vsel %vm942_vm2, %v940_v55, %v1681_v41  ;;  %v2304_v63 = vsel %vm942_vm2, %v941_v3, %v1682_v17  ;;  %v1878_v6 = vpack.i.bf16 %v1484_v0, %v1483_v58 }
  0xb6   : > { %1874 = vrot.lane.b32.xlu2 %v1873_v25, %s1931_s9 }
  0xb7   : > { %1864 = vrot.lane.b32.xlu0 %v2195_v35, %s1928_s6  ;;  %1869 = vrot.lane.b32.xlu1 %v1868_v52, %s1927_s5  ;;  %s2497_s5 = scalar_lea.vmem %s2555_s3, %s1380_s26  ;;  %s1381_s6 = sshll.u32 %s2568_s16, 1 }
  0xb8   : > { %v2322_v11 = vpop.permute.xlu2 %1709  ;;  %s239_s7 = sadd.s32 %s1381_s6, %s2572_s15 }
  0xb9   : > { %v1660_v44 = vpop.permute.xlu1 %1659  ;;  %v2312_v1 = vpop.permute.xlu0 %1654 }
  0xba   : > { %v1662_v2 = vunpack.i.h.bf16 %v1660_v44  ;;  %v1661_v5 = vunpack.i.l.bf16 %v1660_v44 }
  0xbc   : > { %v2316_v9 = vsel %vm942_vm2, %v2202_v33, %v1661_v5  ;;  %v2320_v35 = vsel %vm942_vm2, %v2205_v38, %v1662_v2  ;;  %v1566_v33 = vunpack.i.l.bf16 %v2184_v23  ;;  %v1606_v23 = vunpack.i.l.bf16 %v2175_v18 }
  0xbe   : > { %v909_v30 = vsel %vm908_vm0, %v246_v47, %v1566_v33  ;;  %v1627_v33 = vunpack.i.h.bf16 %v2270_v29  ;;  %v1626_v47 = vunpack.i.l.bf16 %v2270_v29  ;;  %v1712_v29 = vunpack.i.h.bf16 %v2322_v11 }
  0xbf   : > { %1879 = vrot.lane.b32.xlu0 %v1878_v6, %s1930_s8  ;;  %v926_v36 = vsel %vm925_vm1, %v909_v30, %v1606_v23  ;;  %s1382_s8 = sshll.u32 %s239_s7, 1 }
  0xc0   : > { %v2349_v31 = vpop.permute.xlu2 %1724  ;;  %s241_s11 = scalar_lea.vmem %s2556_s4, %s1382_s8 }
  0xc1   : > { %v1675_v12 = vpop.permute.xlu1 %1674  ;;  %v1670_v13 = vpop.permute.xlu0 %1669 }
  0xc2   : > { %v1677_v42 = vunpack.i.h.bf16 %v1675_v12  ;;  %v1676_v19 = vunpack.i.l.bf16 %v1675_v12  ;;  %v1672_v20 = vunpack.i.h.bf16 %v1670_v13  ;;  %v1671_v60 = vunpack.i.l.bf16 %v1670_v13 }
  0xc4   : > { %v2329_v21 = vsel %vm942_vm2, %v2226_v61, %v1676_v19  ;;  %v2333_v38 = vsel %vm942_vm2, %v2229_v62, %v1677_v42  ;;  %v2336_v16 = vsel %vm942_vm2, %v936_v15, %v1671_v60  ;;  %v2339_v27 = vsel %vm942_vm2, %v937_v8, %v1672_v20 }
  0xc5   : > { %v910_v61 = vsel %vm908_vm0, %v247_v48, %v1567_v26  ;;  %v1646_v62 = vunpack.i.l.bf16 %v2289_v24  ;;  %v1697_v24 = vunpack.i.h.bf16 %v2294_v54  ;;  %v1587_v20 = vunpack.i.h.bf16 %v2155_v10 }
  0xc6   : > { %v927_v37 = vsel %vm925_vm1, %v910_v61, %v1607_v28  ;;  %v1586_v60 = vunpack.i.l.bf16 %v2155_v10  ;;  %v1657_v48 = vunpack.i.h.bf16 %v2312_v1  ;;  %v1656_v28 = vunpack.i.l.bf16 %v2312_v1 }
  0xc7   : > { %v943_v18 = vsel %vm942_vm2, %v926_v36, %v1646_v62  ;;  %v944_v14 = vsel %vm942_vm2, %v927_v37, %v1647_v43  ;;  %v918_v30 = vsel %vm908_vm0, %v2099_v57, %v1587_v20  ;;  %v1667_v61 = vunpack.i.h.bf16 %v2237_v4 }
  0xc8   : > { %v2361_v53 = vpop.permute.xlu2 %1739  ;;  %v917_v23 = vsel %vm908_vm0, %v2096_v56, %v1586_v60  ;;  %v1666_v43 = vunpack.i.l.bf16 %v2237_v4  ;;  %v935_v62 = vsel %vm925_vm1, %v918_v30, %v1627_v33  ;;  %v947_v56 = vsel %vm942_vm2, %v2248_v22, %v1656_v28 }
  0xc9   : > { %v1690_v32 = vpop.permute.xlu1 %1689  ;;  %v1685_v15 = vpop.permute.xlu0 %1684  ;;  %v934_v10 = vsel %vm925_vm1, %v917_v23, %v1626_v47  ;;  %v948_v57 = vsel %vm942_vm2, %v2251_v7, %v1657_v48  ;;  %v1742_v7 = vunpack.i.h.bf16 %v2361_v53 }
  0xca   : > { %v1687_v8 = vunpack.i.h.bf16 %v1685_v15  ;;  %v1686_v34 = vunpack.i.l.bf16 %v1685_v15  ;;  %v1692_v39 = vunpack.i.h.bf16 %v1690_v32  ;;  %v1691_v40 = vunpack.i.l.bf16 %v1690_v32 }
  0xcb   : > { %v1711_v32 = vunpack.i.l.bf16 %v2322_v11  ;;  %v951_v37 = vsel %vm942_vm2, %v934_v10, %v1666_v43  ;;  %v1727_v11 = vunpack.i.h.bf16 %v2349_v31  ;;  %v965_v22 = vsel %vm959_vm4, %v948_v57, %v1712_v29 }
  0xcc   : > { %v960_v17 = vsel %vm959_vm4, %v943_v18, %v1686_v34  ;;  %v961_v41 = vsel %vm959_vm4, %v944_v14, %v1687_v8  ;;  %v952_v18 = vsel %vm942_vm2, %v935_v62, %v1667_v61 }
  0xcd   : > { %v977_v50 = vsel %vm976_vm5, %v960_v17, %v1691_v40  ;;  %v978_v51 = vsel %vm976_vm5, %v961_v41, %v1692_v39  ;;  %v1726_v40 = vunpack.i.l.bf16 %v2349_v31  ;;  %v964_v17 = vsel %vm959_vm4, %v947_v56, %v1711_v32 }
  0xce   : > { %v994_v44 = vsel %vm993_vm6, %v977_v50, %v1696_v49  ;;  %v995_v2 = vsel %vm993_vm6, %v978_v51, %v1697_v24  ;;  %v1741_v41 = vunpack.i.l.bf16 %v2361_v53 }
  0xd0   : > { %v1755_v26 = vpop.permute.xlu2 %1754 }
  0xd1   : > { %v1705_v25 = vpop.permute.xlu1 %1704  ;;  %v1700_v52 = vpop.permute.xlu0 %1699 }
  0xd2   : > { %v1707_v55 = vunpack.i.h.bf16 %v1705_v25  ;;  %v1706_v3 = vunpack.i.l.bf16 %v1705_v25  ;;  %v1702_v58 = vunpack.i.h.bf16 %v1700_v52  ;;  %v1701_v0 = vunpack.i.l.bf16 %v1700_v52 }
  0xd4   : > { %v1011_v54 = vsel %vm1010_vm7, %v994_v44, %v1701_v0  ;;  %v1012_v5 = vsel %vm1010_vm7, %v995_v2, %v1702_v58  ;;  %v1757_v58 = vunpack.i.h.bf16 %v1755_v26  ;;  %v1756_v0 = vunpack.i.l.bf16 %v1755_v26 }
  0xd5   : > { %v1028_v6 = vsel %vm1027_vm8, %v1011_v54, %v1706_v3  ;;  %v1029_v12 = vsel %vm1027_vm8, %v1012_v5, %v1707_v55 }
  0xd6   : > { %v1044_v13 = vpack.c.bf16 %v1029_v12, %v1028_v6 }
  0xd8   : > { %1493 = vmatmul.msk.bf16.vlgmr.msra.gmra.mxu0 %vm1076_vm9, %v1044_v13  ;;  %v2398_v24 = vpop.permute.xlu2 %1769 }
  0xd9   : > { %v1720_v42 = vpop.permute.xlu1 %1719  ;;  %v1715_v19 = vpop.permute.xlu0 %1714 }
  0xda   : > { %v1717_v8 = vunpack.i.h.bf16 %v1715_v19  ;;  %v1716_v34 = vunpack.i.l.bf16 %v1715_v19  ;;  %v1722_v36 = vunpack.i.h.bf16 %v1720_v42  ;;  %v1721_v4 = vunpack.i.l.bf16 %v1720_v42 }
  0xdc   : > { %v981_v49 = vsel %vm976_vm5, %v964_v17, %v1716_v34  ;;  %v982_v50 = vsel %vm976_vm5, %v965_v22, %v1717_v8  ;;  %v968_v51 = vsel %vm959_vm4, %v951_v37, %v1721_v4  ;;  %v969_v25 = vsel %vm959_vm4, %v952_v18, %v1722_v36 }
  0xdd   : > { %v998_v53 = vsel %vm993_vm6, %v981_v49, %v1726_v40  ;;  %v999_v44 = vsel %vm993_vm6, %v982_v50, %v1727_v11 }
  0xe0   : > { %v1785_v43 = vpop.permute.xlu2 %1784 }
  0xe1   : > { %v1735_v15 = vpop.permute.xlu1 %1734  ;;  %v1730_v1 = vpop.permute.xlu0 %1729  ;;  %v1787_v18 = vunpack.i.h.bf16 %v1785_v43 }
  0xe2   : > { %v1732_v14 = vunpack.i.h.bf16 %v1730_v1  ;;  %v1731_v39 = vunpack.i.l.bf16 %v1730_v1  ;;  %v1737_v52 = vunpack.i.h.bf16 %v1735_v15  ;;  %v1736_v31 = vunpack.i.l.bf16 %v1735_v15 }
  0xe4   : > { %v985_v55 = vsel %vm976_vm5, %v968_v51, %v1731_v39  ;;  %v986_v3 = vsel %vm976_vm5, %v969_v25, %v1732_v14  ;;  %v1015_v42 = vsel %vm1010_vm7, %v998_v53, %v1736_v31  ;;  %v1016_v19 = vsel %vm1010_vm7, %v999_v44, %v1737_v52 }
  0xe5   : > { %v1002_v20 = vsel %vm993_vm6, %v985_v55, %v1741_v41  ;;  %v1003_v60 = vsel %vm993_vm6, %v986_v3, %v1742_v7  ;;  %v1786_v14 = vunpack.i.l.bf16 %v1785_v43  ;;  %v1772_v41 = vunpack.i.h.bf16 %v2398_v24 }
  0xe8   : > { %v1800_v56 = vpop.permute.xlu2 %1799 }
  0xe9   : > { %v1750_v2 = vpop.permute.xlu1 %1749  ;;  %v1745_v54 = vpop.permute.xlu0 %1744 }
  0xea   : > { %v1752_v5 = vunpack.i.h.bf16 %v1750_v2  ;;  %v1751_v6 = vunpack.i.l.bf16 %v1750_v2  ;;  %v1747_v12 = vunpack.i.h.bf16 %v1745_v54  ;;  %v1746_v13 = vunpack.i.l.bf16 %v1745_v54 }
  0xeb   : > { %v1802_v2 = vunpack.i.h.bf16 %v1800_v56  ;;  %v1801_v54 = vunpack.i.l.bf16 %v1800_v56 }
  0xec   : > { %v1019_v26 = vsel %vm1010_vm7, %v1002_v20, %v1751_v6  ;;  %v1020_v33 = vsel %vm1010_vm7, %v1003_v60, %v1752_v5  ;;  %v1032_v47 = vsel %vm1027_vm8, %v1015_v42, %v1746_v13  ;;  %v1033_v48 = vsel %vm1027_vm8, %v1016_v19, %v1747_v12 }
  0xed   : > { %v1046_v28 = vpack.c.bf16 %v1033_v48, %v1032_v47  ;;  %v1036_v23 = vsel %vm1027_vm8, %v1019_v26, %v1756_v0  ;;  %v1037_v30 = vsel %vm1027_vm8, %v1020_v33, %v1757_v58 }
  0xee   : > { %v1048_v61 = vpack.c.bf16 %v1037_v30, %v1036_v23 }
  0xef   : > { %1495 = vmatmul.msk.bf16.vlgmr.msra.gmra.mxu1 %vm1076_vm9, %v1046_v28 }
  0xf0   : > { %1497 = vmatmul.msk.bf16.vlgmr.msra.gmra.mxu2 %vm1076_vm9, %v1048_v61  ;;  %v1815_v31 = vpop.permute.xlu2 %1814 }
  0xf1   : > { %v1765_v10 = vpop.permute.xlu1 %1764  ;;  %v1760_v62 = vpop.permute.xlu0 %1759  ;;  %v1817_v43 = vunpack.i.h.bf16 %v1815_v31 }
  0xf2   : > { %v1762_v29 = vunpack.i.h.bf16 %v1760_v62  ;;  %v1761_v32 = vunpack.i.l.bf16 %v1760_v62  ;;  %v1767_v57 = vunpack.i.h.bf16 %v1765_v10  ;;  %v1766_v8 = vunpack.i.l.bf16 %v1765_v10 }
  0xf3   : > { %v1816_v10 = vunpack.i.l.bf16 %v1815_v31 }
  0xf4   : > { %v962_v34 = vsel %vm959_vm4, %v2256_v45, %v1761_v32  ;;  %v963_v36 = vsel %vm959_vm4, %v2259_v46, %v1762_v29  ;;  %v1771_v45 = vunpack.i.l.bf16 %v2398_v24  ;;  %v973_v24 = vsel %vm959_vm4, %v2333_v38, %v1772_v41 }
  0xf5   : > { %v979_v39 = vsel %vm976_vm5, %v962_v34, %v1766_v8  ;;  %v980_v11 = vsel %vm976_vm5, %v963_v36, %v1767_v57 }
  0xf6   : > { %v972_v44 = vsel %vm959_vm4, %v2329_v21, %v1771_v45 }
  0xf8   : > { %v1830_v48 = vpop.permute.xlu2 %1829 }
  0xf9   : > { %v1780_v15 = vpop.permute.xlu1 %1779  ;;  %v1775_v1 = vpop.permute.xlu0 %1774 }
  0xfa   : > { %v1777_v4 = vunpack.i.h.bf16 %v1775_v1  ;;  %v1776_v37 = vunpack.i.l.bf16 %v1775_v1  ;;  %v1782_v50 = vunpack.i.h.bf16 %v1780_v15  ;;  %v1781_v51 = vunpack.i.l.bf16 %v1780_v15 }
  0xfc   : > { %v996_v40 = vsel %vm993_vm6, %v979_v39, %v1776_v37  ;;  %v997_v17 = vsel %vm993_vm6, %v980_v11, %v1777_v4  ;;  %v989_v5 = vsel %vm976_vm5, %v972_v44, %v1781_v51  ;;  %v990_v6 = vsel %vm976_vm5, %v973_v24, %v1782_v50 }
  0xfd   : > { %v1013_v25 = vsel %vm1010_vm7, %v996_v40, %v1786_v14  ;;  %v1014_v52 = vsel %vm1010_vm7, %v997_v17, %v1787_v18  ;;  %v1832_v17 = vunpack.i.h.bf16 %v1830_v48 }
 0x100   : > { %v1845_v1 = vpop.permute.xlu2 %1844 }
 0x101   : > { %v1795_v22 = vpop.permute.xlu1 %1794  ;;  %v1790_v7 = vpop.permute.xlu0 %1789  ;;  %v1847_v56 = vunpack.i.h.bf16 %v1845_v1  ;;  %v1846_v57 = vunpack.i.l.bf16 %v1845_v1 }
 0x102   : > { %v1797_v49 = vunpack.i.h.bf16 %v1795_v22  ;;  %v1796_v46 = vunpack.i.l.bf16 %v1795_v22  ;;  %v1792_v55 = vunpack.i.h.bf16 %v1790_v7  ;;  %v1791_v3 = vunpack.i.l.bf16 %v1790_v7 }
 0x103   : > { %v1831_v22 = vunpack.i.l.bf16 %v1830_v48 }
 0x104   : > { %v1030_v58 = vsel %vm1027_vm8, %v1013_v25, %v1796_v46  ;;  %v1031_v0 = vsel %vm1027_vm8, %v1014_v52, %v1797_v49  ;;  %v1006_v12 = vsel %vm993_vm6, %v989_v5, %v1791_v3  ;;  %v1007_v13 = vsel %vm993_vm6, %v990_v6, %v1792_v55 }
 0x105   : > { %v1045_v53 = vpack.c.bf16 %v1031_v0, %v1030_v58  ;;  %v1023_v21 = vsel %vm1010_vm7, %v1006_v12, %v1801_v54  ;;  %v1024_v38 = vsel %vm1010_vm7, %v1007_v13, %v1802_v2 }
 0x107   : > { %1494 = vmatmul.msk.bf16.gmra.mxu0 %vm1076_vm9, %v1045_v53 }
 0x109   : > { %v1810_v42 = vpop.permute.xlu1 %1809  ;;  %v1805_v19 = vpop.permute.xlu0 %1804 }
 0x10a   : > { %v1807_v20 = vunpack.i.h.bf16 %v1805_v19  ;;  %v1806_v60 = vunpack.i.l.bf16 %v1805_v19  ;;  %v1812_v30 = vunpack.i.h.bf16 %v1810_v42  ;;  %v1811_v61 = vunpack.i.l.bf16 %v1810_v42 }
 0x10c   : > { %v1040_v26 = vsel %vm1027_vm8, %v1023_v21, %v1806_v60  ;;  %v1041_v33 = vsel %vm1027_vm8, %v1024_v38, %v1807_v20  ;;  %v966_v62 = vsel %vm959_vm4, %v2316_v9, %v1811_v61  ;;  %v967_v29 = vsel %vm959_vm4, %v2320_v35, %v1812_v30 }
 0x10d   : > { %v1050_v47 = vpack.c.bf16 %v1041_v33, %v1040_v26  ;;  %v983_v8 = vsel %vm976_vm5, %v966_v62, %v1816_v10  ;;  %v984_v34 = vsel %vm976_vm5, %v967_v29, %v1817_v43 }
 0x10f   : > { %1499 = vmatmul.msk.bf16.vlgmr.msra.gmra.mxu3 %vm1076_vm9, %v1050_v47 }
 0x111   : > { %v1825_v28 = vpop.permute.xlu1 %1824  ;;  %v1820_v23 = vpop.permute.xlu0 %1819 }
 0x112   : > { %v1827_v32 = vunpack.i.h.bf16 %v1825_v28  ;;  %v1826_v15 = vunpack.i.l.bf16 %v1825_v28  ;;  %v1822_v37 = vunpack.i.h.bf16 %v1820_v23  ;;  %v1821_v18 = vunpack.i.l.bf16 %v1820_v23 }
 0x114   : > { %v1000_v9 = vsel %vm993_vm6, %v983_v8, %v1826_v15  ;;  %v1001_v11 = vsel %vm993_vm6, %v984_v34, %v1827_v32  ;;  %v970_v45 = vsel %vm959_vm4, %v2336_v16, %v1821_v18  ;;  %v971_v49 = vsel %vm959_vm4, %v2339_v27, %v1822_v37  ;;  %v1860_v27 = vpop.permute.xlu2 %1859 }
 0x115   : > { %v987_v25 = vsel %vm976_vm5, %v970_v45, %v1831_v22  ;;  %v988_v52 = vsel %vm976_vm5, %v971_v49, %v1832_v17  ;;  %v1862_v12 = vunpack.i.h.bf16 %v1860_v27  ;;  %v1861_v13 = vunpack.i.l.bf16 %v1860_v27 }
 0x117   : > { %v974_v21 = vsel %vm959_vm4, %v2301_v59, %v1861_v13  ;;  %v975_v38 = vsel %vm959_vm4, %v2304_v63, %v1862_v12 }
 0x119   : > { %v1840_v36 = vpop.permute.xlu1 %1839  ;;  %v1835_v4 = vpop.permute.xlu0 %1834 }
 0x11a   : > { %v1837_v14 = vunpack.i.h.bf16 %v1835_v4  ;;  %v1836_v39 = vunpack.i.l.bf16 %v1835_v4  ;;  %v1842_v50 = vunpack.i.h.bf16 %v1840_v36  ;;  %v1841_v51 = vunpack.i.l.bf16 %v1840_v36 }
 0x11c   : > { %v1017_v35 = vsel %vm1010_vm7, %v1000_v9, %v1836_v39  ;;  %v1018_v40 = vsel %vm1010_vm7, %v1001_v11, %v1837_v14  ;;  %v1004_v16 = vsel %vm993_vm6, %v987_v25, %v1841_v51  ;;  %v1005_v44 = vsel %vm993_vm6, %v988_v52, %v1842_v50  ;;  %v1875_v47 = vpop.permute.xlu2 %1874 }
 0x11d   : > { %v1034_v7 = vsel %vm1027_vm8, %v1017_v35, %v1846_v57  ;;  %v1035_v41 = vsel %vm1027_vm8, %v1018_v40, %v1847_v56  ;;  %v1877_v23 = vunpack.i.h.bf16 %v1875_v47  ;;  %v1876_v30 = vunpack.i.l.bf16 %v1875_v47  ;;  %v2492_v56 = vld [vmem:[%s2554_s2] ss:$0 sm:$0xff] }
 0x11e   : > { %v1047_v46 = vpack.c.bf16 %v1035_v41, %v1034_v7 }
 0x120   : > { %1496 = vmatmul.msk.bf16.gmra.mxu1 %vm1076_vm9, %v1047_v46 }
 0x121   : > { %v1850_v31 = vpop.permute.xlu0 %1849  ;;  %v1855_v55 = vpop.permute.xlu1 %1854 }
 0x122   : > { %v1852_v3 = vunpack.i.h.bf16 %v1850_v31  ;;  %v1851_v58 = vunpack.i.l.bf16 %v1850_v31  ;;  %v1857_v0 = vunpack.i.h.bf16 %v1855_v55  ;;  %v1856_v53 = vunpack.i.l.bf16 %v1855_v55 }
 0x124   : > { %v1021_v24 = vsel %vm1010_vm7, %v1004_v16, %v1851_v58  ;;  %v1022_v2 = vsel %vm1010_vm7, %v1005_v44, %v1852_v3 }
 0x125   : > { %v1038_v54 = vsel %vm1027_vm8, %v1021_v24, %v1856_v53  ;;  %v1039_v5 = vsel %vm1027_vm8, %v1022_v2, %v1857_v0 }
 0x126   : > { %v1049_v6 = vpack.c.bf16 %v1039_v5, %v1038_v54 }
 0x128   : > { %1498 = vmatmul.msk.bf16.gmra.mxu2 %vm1076_vm9, %v1049_v6 }
 0x129   : > { %v1865_v42 = vpop.permute.xlu0 %1864  ;;  %v1870_v19 = vpop.permute.xlu1 %1869 }
 0x12a   : > { %v1867_v20 = vunpack.i.h.bf16 %v1865_v42  ;;  %v1866_v60 = vunpack.i.l.bf16 %v1865_v42  ;;  %v1872_v26 = vunpack.i.h.bf16 %v1870_v19  ;;  %v1871_v33 = vunpack.i.l.bf16 %v1870_v19 }
 0x12c   : > { %v991_v48 = vsel %vm976_vm5, %v974_v21, %v1866_v60  ;;  %v992_v28 = vsel %vm976_vm5, %v975_v38, %v1867_v20 }
 0x12d   : > { %v1008_v61 = vsel %vm993_vm6, %v991_v48, %v1871_v33  ;;  %v1009_v43 = vsel %vm993_vm6, %v992_v28, %v1872_v26 }
 0x12e   : > { %v1025_v63 = vsel %vm1010_vm7, %v1008_v61, %v1876_v30  ;;  %v1026_v29 = vsel %vm1010_vm7, %v1009_v43, %v1877_v23 }
 0x131   : > { %v1880_v10 = vpop.permute.xlu0 %1879 }
 0x132   : > { %v1882_v59 = vunpack.i.h.bf16 %v1880_v10  ;;  %v1881_v62 = vunpack.i.l.bf16 %v1880_v10 }
 0x134   : > { %v1042_v32 = vsel %vm1027_vm8, %v1025_v63, %v1881_v62  ;;  %v1043_v15 = vsel %vm1027_vm8, %v1026_v29, %v1882_v59 }
 0x135   : > { %v1051_v1 = vpack.c.bf16 %v1043_v15, %v1042_v32 }
 0x137   : > { %1500 = vmatmul.msk.bf16.gmra.mxu3 %vm1076_vm9, %v1051_v1 }
 0x155   : > { %v1114_v57 = vpop.f32.mrf.mxu0 }
 0x156   : > { %v1115_v8 = vadd.f32 %v2492_v56, %v1114_v57 }
 0x158   : > { %1154 = vst [vmem:[%s2497_s5] sm:$0xff] %v1115_v8  ;;  %v1191_v4 = vmul.f32 %v1115_v8, %v1115_v8 }
 0x15d   : > { %v1116_v34 = vpop.f32.mrf.mxu0 }
 0x15e   : > { %v1117_v36 = vadd.f32 %v2492_v56, %v1116_v34 }
 0x160   : > { %1155 = vst [vmem:[%s2497_s5 + $0x8] sm:$0xff] %v1117_v36  ;;  %v1170_v37 = vadd.f32 %v1117_v36, %v1115_v8  ;;  %v1192_v18 = vmul.f32 %v1117_v36, %v1117_v36 }
 0x162   : > { %v1207_v14 = vadd.f32 %v1192_v18, %v1191_v4 }
 0x16c   : > { %v1124_v39 = vpop.f32.mrf.mxu1 }
 0x16d   : > { %v1125_v9 = vadd.f32 %v2492_v56, %v1124_v39 }
 0x16f   : > { %1158 = vst [vmem:[%s2497_s5 + $0x20] sm:$0xff] %v1125_v9  ;;  %v1195_v55 = vmul.f32 %v1125_v9, %v1125_v9 }
 0x173   : > { %v1134_v11 = vpop.f32.mrf.mxu2 }
 0x174   : > { %v1135_v35 = vadd.f32 %v2492_v56, %v1134_v11  ;;  %v1126_v40 = vpop.f32.mrf.mxu1 }
 0x175   : > { %v1127_v17 = vadd.f32 %v2492_v56, %v1126_v40 }
 0x176   : > { %1162 = vst [vmem:[%s2497_s5 + $0x40] sm:$0xff] %v1135_v35  ;;  %v1199_v38 = vmul.f32 %v1135_v35, %v1135_v35 }
 0x177   : > { %1159 = vst [vmem:[%s2497_s5 + $0x28] sm:$0xff] %v1127_v17  ;;  %v1196_v54 = vmul.f32 %v1127_v17, %v1127_v17 }
 0x17b   : > { %v1136_v22 = vpop.f32.mrf.mxu2 }
 0x17c   : > { %v1137_v7 = vadd.f32 %v2492_v56, %v1136_v22 }
 0x17e   : > { %1163 = vst [vmem:[%s2497_s5 + $0x48] sm:$0xff] %v1137_v7  ;;  %v1200_v23 = vmul.f32 %v1137_v7, %v1137_v7 }
 0x184   : > { %v1119_v41 = vpop.f32.mrf.mxu0 }
 0x185   : > { %v1120_v45 = vadd.f32 %v2492_v56, %v1119_v41 }
 0x187   : > { %1156 = vst [vmem:[%s2497_s5 + $0x10] sm:$0xff] %v1120_v45  ;;  %v1193_v49 = vmul.f32 %v1120_v45, %v1120_v45  ;;  %v1171_v50 = vadd.f32 %v1170_v37, %v1120_v45 }
 0x189   : > { %v1208_v25 = vadd.f32 %v1207_v14, %v1193_v49 }
 0x18c   : > { %v1121_v46 = vpop.f32.mrf.mxu0 }
 0x18d   : > { %v1122_v51 = vadd.f32 %v2492_v56, %v1121_v46 }
 0x18f   : > { %1157 = vst [vmem:[%s2497_s5 + $0x18] sm:$0xff] %v1122_v51  ;;  %v1172_v52 = vadd.f32 %v1171_v50, %v1122_v51  ;;  %v1194_v31 = vmul.f32 %v1122_v51, %v1122_v51 }
 0x191   : > { %v1173_v3 = vadd.f32 %v1172_v52, %v1125_v9  ;;  %v1209_v58 = vadd.f32 %v1208_v25, %v1194_v31 }
 0x192   : > { %v1144_v0 = vpop.f32.mrf.mxu3 }
 0x193   : > { %v1210_v53 = vadd.f32 %v1209_v58, %v1195_v55  ;;  %v1145_v16 = vadd.f32 %v2492_v56, %v1144_v0  ;;  %v1174_v5 = vadd.f32 %v1173_v3, %v1127_v17 }
 0x195   : > { %1166 = vst [vmem:[%s2497_s5 + $0x60] sm:$0xff] %v1145_v16  ;;  %v1211_v42 = vadd.f32 %v1210_v53, %v1196_v54  ;;  %v1203_v57 = vmul.f32 %v1145_v16, %v1145_v16 }
 0x19a   : > { %v1146_v44 = vpop.f32.mrf.mxu3 }
 0x19b   : > { %v1147_v27 = vadd.f32 %v2492_v56, %v1146_v44 }
 0x19d   : > { %1167 = vst [vmem:[%s2497_s5 + $0x68] sm:$0xff] %v1147_v27  ;;  %v1129_v24 = vpop.f32.mrf.mxu1  ;;  %v1204_v4 = vmul.f32 %v1147_v27, %v1147_v27 }
 0x19e   : > { %v1130_v2 = vadd.f32 %v2492_v56, %v1129_v24 }
 0x1a0   : > { %1160 = vst [vmem:[%s2497_s5 + $0x30] sm:$0xff] %v1130_v2  ;;  %v1197_v6 = vmul.f32 %v1130_v2, %v1130_v2  ;;  %v1175_v13 = vadd.f32 %v1174_v5, %v1130_v2 }
 0x1a2   : > { %v1212_v20 = vadd.f32 %v1211_v42, %v1197_v6 }
 0x1a5   : > { %v1131_v12 = vpop.f32.mrf.mxu1 }
 0x1a6   : > { %v1132_v19 = vadd.f32 %v2492_v56, %v1131_v12 }
 0x1a8   : > { %1161 = vst [vmem:[%s2497_s5 + $0x38] sm:$0xff] %v1132_v19  ;;  %v1176_v60 = vadd.f32 %v1175_v13, %v1132_v19  ;;  %v1198_v21 = vmul.f32 %v1132_v19, %v1132_v19 }
 0x1aa   : > { %v1177_v26 = vadd.f32 %v1176_v60, %v1135_v35  ;;  %v1213_v33 = vadd.f32 %v1212_v20, %v1198_v21 }
 0x1ab   : > { %v1139_v47 = vpop.f32.mrf.mxu2 }
 0x1ac   : > { %v1214_v48 = vadd.f32 %v1213_v33, %v1199_v38  ;;  %v1140_v28 = vadd.f32 %v2492_v56, %v1139_v47  ;;  %v1178_v30 = vadd.f32 %v1177_v26, %v1137_v7 }
 0x1ae   : > { %1164 = vst [vmem:[%s2497_s5 + $0x50] sm:$0xff] %v1140_v28  ;;  %v1201_v61 = vmul.f32 %v1140_v28, %v1140_v28  ;;  %v1215_v43 = vadd.f32 %v1214_v48, %v1200_v23  ;;  %v1179_v62 = vadd.f32 %v1178_v30, %v1140_v28 }
 0x1b0   : > { %v1216_v29 = vadd.f32 %v1215_v43, %v1201_v61 }
 0x1b3   : > { %v1141_v10 = vpop.f32.mrf.mxu2 }
 0x1b4   : > { %v1142_v59 = vadd.f32 %v2492_v56, %v1141_v10 }
 0x1b6   : > { %1165 = vst [vmem:[%s2497_s5 + $0x58] sm:$0xff] %v1142_v59  ;;  %v1202_v63 = vmul.f32 %v1142_v59, %v1142_v59  ;;  %v1180_v32 = vadd.f32 %v1179_v62, %v1142_v59 }
 0x1b8   : > { %v1217_v15 = vadd.f32 %v1216_v29, %v1202_v63  ;;  %v1181_v8 = vadd.f32 %v1180_v32, %v1145_v16 }
 0x1ba   : > { %v1149_v1 = vpop.f32.mrf.mxu3  ;;  %v1218_v36 = vadd.f32 %v1217_v15, %v1203_v57  ;;  %v1182_v37 = vadd.f32 %v1181_v8, %v1147_v27 }
 0x1bb   : > { %v1150_v34 = vadd.f32 %v2492_v56, %v1149_v1 }
 0x1bc   : > { %v1219_v14 = vadd.f32 %v1218_v36, %v1204_v4 }
 0x1bd   : > { %1168 = vst [vmem:[%s2497_s5 + $0x70] sm:$0xff] %v1150_v34  ;;  %v1205_v18 = vmul.f32 %v1150_v34, %v1150_v34  ;;  %v1183_v9 = vadd.f32 %v1182_v37, %v1150_v34 }
 0x1bf   : > { %v1220_v35 = vadd.f32 %v1219_v14, %v1205_v18 }
 0x1c2   : > { %v1151_v39 = vpop.f32.mrf.mxu3 }
 0x1c3   : > { %v1152_v11 = vadd.f32 %v2492_v56, %v1151_v39 }
 0x1c5   : > { %1169 = vst [vmem:[%s2497_s5 + $0x78] sm:$0xff] %v1152_v11  ;;  %v1184_v40 = vadd.f32 %v1183_v9, %v1152_v11  ;;  %v1206_v17 = vmul.f32 %v1152_v11, %v1152_v11 }
 0x1c7   : > { %v1185_v22 = vrot.slane %v1184_v40, 4  ;;  %v1221_v7 = vadd.f32 %v1220_v35, %v1206_v17 }
 0x1c9   : > { %v1186_v41 = vadd.f32 %v1185_v22, %v1184_v40  ;;  %v1222_v45 = vrot.slane %v1221_v7, 4 }
 0x1cb   : > { %v1187_v49 = vrot.slane %v1186_v41, 2  ;;  %v1223_v46 = vadd.f32 %v1222_v45, %v1221_v7 }
 0x1cd   : > { %v1188_v50 = vadd.f32 %v1187_v49, %v1186_v41  ;;  %v1224_v51 = vrot.slane %v1223_v46, 2 }
 0x1cf   : > { %v1189_v25 = vrot.slane %v1188_v50, 1  ;;  %v1225_v52 = vadd.f32 %v1224_v51, %v1223_v46 }
 0x1d1   : > { %v1226_v56 = vrot.slane %v1225_v52, 1  ;;  %v1190_v31 = vadd.f32 %v1189_v25, %v1188_v50 }
 0x1d3   : > { %v1227_v55 = vadd.f32 %v1226_v56, %v1225_v52 }
 0x1d5   : > { %v1229_v3 = vsel %vm1228_vm10, %v1190_v31, %v1227_v55 }
 0x1d6   : > { %1230 = vst [vmem:[%s241_s11] sm:$0x3] %v1229_v3 }
 0x1d7 PF: > { %s15_s19 = sadd.s32 1, %s1922_s19   ;;  %s2557_s15 = smov %s1914_s17 }
 0x1d8   : > { %p12_p8 = scmp.ge.s32.totalorder %s15_s19, 6   ;;  %s2558_s16 = smov %s1918_s18 }
 0x1d9   : > { %s2559_s17 = smov %s2562_s20  ;;  %s2560_s18 = smov %s2566_s21 }
 0x1da   :  { %14 = sbr.rel (!%p12_p8) target bundleno = 3 (0x3), region = 77 }

</bundles_post_ra>
